<compile_context>
chip_gen: v5e
topology: v5e:2x2
jax: 0.10.0
libtpu: 0.0.40
codegen_flags: <defaults>
</compile_context>

<pallas_src>
import jax
import jax.numpy as jnp
import numpy as np
from jax.experimental import pallas as pl
from jax.experimental.pallas import tpu as pltpu


# ----------------------------------------------------------------------------
# Pallas kernel: one bidirectional LSTM layer, all timesteps, both directions.
# ----------------------------------------------------------------------------
def _bilstm_layer_kernel(lens_ref, x_ref, w_ih_ref, b_ref, w_hh_f_ref,
                         w_hh_b_ref, out_ref, gx_scr):
    T, B, D = x_ref.shape
    H = w_hh_f_ref.shape[0]
    H4 = 4 * H

    # ---- Hoisted input projection: one big MXU matmul for both directions
    # and all timesteps: (T*B, D) @ (D, 8H) + b  ->  VMEM scratch (T, B, 8H).
    x_flat = x_ref[...].reshape(T * B, D)
    gx_scr[...] = (
        jnp.dot(x_flat, w_ih_ref[...], preferred_element_type=jnp.float32)
        + b_ref[...]
    ).reshape(T, B, 8 * H)

    lens_i = lens_ref[...]          # (B, 1) int32 sequence lengths
    w_hh_f = w_hh_f_ref[...]        # (H, 4H)
    w_hh_b = w_hh_b_ref[...]        # (H, 4H)

    def cell(gates, h, c, valid):
        # PyTorch gate order: i, f, g, o.
        i_g = jax.nn.sigmoid(gates[:, 0 * H:1 * H])
        f_g = jax.nn.sigmoid(gates[:, 1 * H:2 * H])
        g_g = jnp.tanh(gates[:, 2 * H:3 * H])
        o_g = jax.nn.sigmoid(gates[:, 3 * H:4 * H])
        c_new = f_g * c + i_g * g_g
        h_new = o_g * jnp.tanh(c_new)
        out_h = jnp.where(valid, h_new, 0.0)   # padded outputs are exactly 0
        h = jnp.where(valid, h_new, h)         # state advances only when valid
        c = jnp.where(valid, c_new, c)
        return out_h, h, c

    def body(t, carry):
        h_f, c_f, h_b, c_b = carry
        tb = T - 1 - t

        # Forward direction at time t.
        gx_t = gx_scr[t]                                       # (B, 8H)
        gates_f = gx_t[:, :H4] + jnp.dot(
            h_f, w_hh_f, preferred_element_type=jnp.float32)
        out_f, h_f, c_f = cell(gates_f, h_f, c_f, lens_i > t)
        out_ref[t, :, 0:H] = out_f

        # Backward direction at time T-1-t.
        gx_tb = gx_scr[tb]                                     # (B, 8H)
        gates_b = gx_tb[:, H4:] + jnp.dot(
            h_b, w_hh_b, preferred_element_type=jnp.float32)
        out_b, h_b, c_b = cell(gates_b, h_b, c_b, lens_i > tb)
        out_ref[tb, :, H:2 * H] = out_b

        return h_f, c_f, h_b, c_b

    z = jnp.zeros((B, H), jnp.float32)     # rnn_zero_state
    jax.lax.fori_loop(0, T, body, (z, z, z, z), unroll=True)


def bilstm_layer_pallas(x_tbd, lens_b1, layer):
    """One bidirectional LSTM layer. x_tbd: (T, B, D) -> (T, B, 2H)."""
    T, B, D = x_tbd.shape
    H = layer["w_hh_f"].shape[0]
    return pl.pallas_call(
        _bilstm_layer_kernel,
        out_shape=jax.ShapeDtypeStruct((T, B, 2 * H), jnp.float32),
        scratch_shapes=[pltpu.VMEM((T, B, 8 * H), jnp.float32)],
    )(lens_b1, x_tbd, layer["w_ih"], layer["b"],
      layer["w_hh_f"], layer["w_hh_b"])


# ----------------------------------------------------------------------------
# Pure-JAX reference (same math) for a correctness check.
# ----------------------------------------------------------------------------
def bilstm_layer_ref(x_tbd, lens_b1, layer):
    T, B, _ = x_tbd.shape
    H = layer["w_hh_f"].shape[0]
    H4 = 4 * H
    mask = jnp.arange(T)[:, None, None] < lens_b1[None, :, :]   # (T, B, 1) bool
    w_ih, b = layer["w_ih"], layer["b"]

    def run_dir(w_ih_d, w_hh_d, b_d, reverse):
        def step(carry, inp):
            h, c = carry
            x_t, m = inp
            gates = x_t @ w_ih_d + h @ w_hh_d + b_d
            i_g = jax.nn.sigmoid(gates[:, 0 * H:1 * H])
            f_g = jax.nn.sigmoid(gates[:, 1 * H:2 * H])
            g_g = jnp.tanh(gates[:, 2 * H:3 * H])
            o_g = jax.nn.sigmoid(gates[:, 3 * H:4 * H])
            c_new = f_g * c + i_g * g_g
            h_new = o_g * jnp.tanh(c_new)
            out = jnp.where(m, h_new, 0.0)
            return (jnp.where(m, h_new, h), jnp.where(m, c_new, c)), out

        xs = (x_tbd[::-1], mask[::-1]) if reverse else (x_tbd, mask)
        init = (jnp.zeros((B, H), jnp.float32), jnp.zeros((B, H), jnp.float32))
        _, outs = jax.lax.scan(step, init, xs)
        return outs[::-1] if reverse else outs

    out_f = run_dir(w_ih[:, :H4], layer["w_hh_f"], b[:, :H4], reverse=False)
    out_b = run_dir(w_ih[:, H4:], layer["w_hh_b"], b[:, H4:], reverse=True)
    return jnp.concatenate([out_f, out_b], axis=-1)


# ----------------------------------------------------------------------------
# Full LSTMRelationModel forward.
# ----------------------------------------------------------------------------
def init_params(key, opt):
    """PyTorch LSTM shapes/init (U(-1/sqrt(H), 1/sqrt(H))), fwd/bwd W_ih fused."""
    H = opt["rnn_hidden"]
    D = opt["emb_dim"]
    assert opt["rnn_bidirect"], "this kernel implements the bidirectional variant"
    bound = 1.0 / np.sqrt(H)

    def u(k, shape):
        return jax.random.uniform(k, shape, jnp.float32, -bound, bound)

    layers = []
    for layer_idx in range(opt["rnn_layers"]):
        in_dim = D if layer_idx == 0 else 2 * H
        key, *ks = jax.random.split(key, 9)
        w_ih_f, w_hh_f = u(ks[0], (in_dim, 4 * H)), u(ks[1], (H, 4 * H))
        b_ih_f, b_hh_f = u(ks[2], (4 * H,)), u(ks[3], (4 * H,))
        w_ih_b, w_hh_b = u(ks[4], (in_dim, 4 * H)), u(ks[5], (H, 4 * H))
        b_ih_b, b_hh_b = u(ks[6], (4 * H,)), u(ks[7], (4 * H,))
        layers.append({
            "w_ih": jnp.concatenate([w_ih_f, w_ih_b], axis=1),          # (in_dim, 8H)
            "b": jnp.concatenate([b_ih_f + b_hh_f,
                                  b_ih_b + b_hh_b])[None, :],           # (1, 8H)
            "w_hh_f": w_hh_f,                                           # (H, 4H)
            "w_hh_b": w_hh_b,                                           # (H, 4H)
        })
    return {"layers": layers}


def lstm_relation_forward(params, x_btd, lens, *, use_pallas=True):
    """x_btd: (B, T, emb_dim), lens: (B,) int. Returns (B, T, 2*H)."""
    lens_b1 = lens.astype(jnp.int32)[:, None]                     # (B, 1)
    h = jnp.transpose(x_btd, (1, 0, 2)).astype(jnp.float32)       # time-major once
    run = bilstm_layer_pallas if use_pallas else bilstm_layer_ref
    for layer in params["layers"]:
        h = run(h, lens_b1, layer)                                # (T, B, 2H)
    out = jnp.transpose(h, (1, 0, 2))                             # batch-first once
    # rnn_drop: nn.Dropout in eval mode is identity.
    # TODO(synk): training-mode dropout (rnn_drop, inter-layer LSTM dropout) not modeled.
    return out


if __name__ == "__main__":
    opt = {
        "emb_dim": 32,
        "rnn_hidden": 32,
        "rnn_layers": 2,
        "rnn_dropout": 0.0,
        "rnn_bidirect": True,
    }
    B, T = 8, 8

    key = jax.random.PRNGKey(0)
    kp, kx = jax.random.split(key)
    params = init_params(kp, opt)

    x = jax.random.normal(kx, (B, T, opt["emb_dim"]), jnp.float32)
    # pack_padded_sequence expects lengths sorted descending; max len == T.
    lens = jnp.array([8, 7, 6, 5, 5, 4, 3, 2], dtype=jnp.int32)

    out = jax.block_until_ready(lstm_relation_forward(params, x, lens, use_pallas=True))
    ref = jax.block_until_ready(lstm_relation_forward(params, x, lens, use_pallas=False))

    assert out.shape == (B, T, 2 * opt["rnn_hidden"]), out.shape
    np.testing.assert_allclose(np.asarray(out), np.asarray(ref), rtol=1e-4, atol=1e-4)

    # Padded positions must be exactly zero (pad_packed_sequence semantics).
    valid = np.arange(T)[None, :] < np.asarray(lens)[:, None]
    assert np.all(np.asarray(out)[~valid] == 0.0)

    print("KERNEL_OK")
</pallas_src>

<mosaic_0001>
module attributes {stable_mosaic.version = 11 : i64} {
  func.func @_bilstm_layer_kernel(%arg0: memref<8x1xi32, #tpu.memory_space<vmem>>, %arg1: memref<8x8x32xf32, #tpu.memory_space<vmem>>, %arg2: memref<32x256xf32, #tpu.memory_space<vmem>>, %arg3: memref<1x256xf32, #tpu.memory_space<vmem>>, %arg4: memref<32x128xf32, #tpu.memory_space<vmem>>, %arg5: memref<32x128xf32, #tpu.memory_space<vmem>>, %arg6: memref<8x8x64xf32, #tpu.memory_space<vmem>>, %arg7: memref<8x8x256xf32, #tpu.memory_space<vmem>>) attributes {dimension_semantics = [], scalar_prefetch = 0 : i64, scratch_operands = 1 : i64, tpu.core_type = #tpu.core_type<tc>} {
    %c0 = arith.constant 0 : index
    %c0_0 = arith.constant 0 : index
    %c0_1 = arith.constant 0 : index
    %0 = vector.load %arg1[%c0, %c0_0, %c0_1] : memref<8x8x32xf32, #tpu.memory_space<vmem>>, vector<8x8x32xf32>
    %1 = vector.shape_cast %0 : vector<8x8x32xf32> to vector<64x32xf32>
    %c0_2 = arith.constant 0 : index
    %c0_3 = arith.constant 0 : index
    %2 = vector.load %arg2[%c0_2, %c0_3] : memref<32x256xf32, #tpu.memory_space<vmem>>, vector<32x256xf32>
    %cst = arith.constant dense<0.000000e+00> : vector<64x256xf32>
    %3 = tpu.matmul %1, %2, %cst {dimension_numbers = #tpu.dot_dimension_numbers<[1], [0], [0], [1], [0, 0, 1, 1], [], []>} : vector<64x32xf32>, vector<32x256xf32>, vector<64x256xf32> -> vector<64x256xf32>
    %c0_4 = arith.constant 0 : index
    %c0_5 = arith.constant 0 : index
    %4 = vector.load %arg3[%c0_4, %c0_5] : memref<1x256xf32, #tpu.memory_space<vmem>>, vector<1x256xf32>
    %5 = vector.broadcast %4 : vector<1x256xf32> to vector<64x256xf32>
    %6 = arith.addf %3, %5 : vector<64x256xf32>
    %7 = vector.shape_cast %6 : vector<64x256xf32> to vector<8x8x256xf32>
    %c0_6 = arith.constant 0 : index
    %c0_7 = arith.constant 0 : index
    %c0_8 = arith.constant 0 : index
    %8 = vector.load %arg7[%c0_6, %c0_7, %c0_8] : memref<8x8x256xf32, #tpu.memory_space<vmem>>, vector<8x8x256xf32>
    tpu.vector_store %arg7[%c0_6, %c0_7, %c0_8], %7 {strides = array<i32>} : memref<8x8x256xf32, #tpu.memory_space<vmem>>, vector<8x8x256xf32>,
    %c0_9 = arith.constant 0 : index
    %c0_10 = arith.constant 0 : index
    %9 = vector.load %arg0[%c0_9, %c0_10] : memref<8x1xi32, #tpu.memory_space<vmem>>, vector<8x1xi32>
    %c0_11 = arith.constant 0 : index
    %c0_12 = arith.constant 0 : index
    %10 = vector.load %arg4[%c0_11, %c0_12] : memref<32x128xf32, #tpu.memory_space<vmem>>, vector<32x128xf32>
    %c0_13 = arith.constant 0 : index
    %c0_14 = arith.constant 0 : index
    %11 = vector.load %arg5[%c0_13, %c0_14] : memref<32x128xf32, #tpu.memory_space<vmem>>, vector<32x128xf32>
    %cst_15 = arith.constant 0.000000e+00 : f32
    %12 = vector.broadcast %cst_15 : f32 to vector<8x32xf32>
    %c0_i32 = arith.constant 0 : i32
    %c7_i32 = arith.constant 7 : i32
    %13 = arith.subi %c7_i32, %c0_i32 : i32
    %14 = arith.index_cast %c0_i32 : i32 to index
    %c0_16 = arith.constant 0 : index
    %c0_17 = arith.constant 0 : index
    %15 = vector.load %arg7[%14, %c0_16, %c0_17] : memref<8x8x256xf32, #tpu.memory_space<vmem>>, vector<1x8x256xf32>
    %16 = vector.shape_cast %15 : vector<1x8x256xf32> to vector<8x256xf32>
    %17 = vector.extract_strided_slice %16 {offsets = [0, 0], sizes = [8, 128], strides = [1, 1]} : vector<8x256xf32> to vector<8x128xf32>
    %cst_18 = arith.constant dense<0.000000e+00> : vector<8x128xf32>
    %18 = tpu.matmul %12, %10, %cst_18 {dimension_numbers = #tpu.dot_dimension_numbers<[1], [0], [0], [1], [0, 0, 1, 1], [], []>} : vector<8x32xf32>, vector<32x128xf32>, vector<8x128xf32> -> vector<8x128xf32>
    %19 = arith.addf %17, %18 : vector<8x128xf32>
    %20 = vector.broadcast %c0_i32 : i32 to vector<8x1xi32>
    %21 = arith.cmpi sgt, %9, %20 : vector<8x1xi32>
    %22 = vector.extract_strided_slice %19 {offsets = [0, 0], sizes = [8, 32], strides = [1, 1]} : vector<8x128xf32> to vector<8x32xf32>
    %23 = arith.negf %22 : vector<8x32xf32>
    %24 = math.exp %23 : vector<8x32xf32>
    %cst_19 = arith.constant 1.000000e+00 : f32
    %25 = vector.broadcast %cst_19 : f32 to vector<8x32xf32>
    %26 = arith.addf %25, %24 : vector<8x32xf32>
    %27 = arith.divf %25, %26 : vector<8x32xf32>
    %28 = vector.extract_strided_slice %19 {offsets = [0, 32], sizes = [8, 32], strides = [1, 1]} : vector<8x128xf32> to vector<8x32xf32>
    %29 = arith.negf %28 : vector<8x32xf32>
    %30 = math.exp %29 : vector<8x32xf32>
    %cst_20 = arith.constant 1.000000e+00 : f32
    %31 = vector.broadcast %cst_20 : f32 to vector<8x32xf32>
    %32 = arith.addf %31, %30 : vector<8x32xf32>
    %33 = arith.divf %31, %32 : vector<8x32xf32>
    %34 = vector.extract_strided_slice %19 {offsets = [0, 64], sizes = [8, 32], strides = [1, 1]} : vector<8x128xf32> to vector<8x32xf32>
    %35 = math.tanh %34 : vector<8x32xf32>
    %36 = vector.extract_strided_slice %19 {offsets = [0, 96], sizes = [8, 32], strides = [1, 1]} : vector<8x128xf32> to vector<8x32xf32>
    %37 = arith.negf %36 : vector<8x32xf32>
    %38 = math.exp %37 : vector<8x32xf32>
    %cst_21 = arith.constant 1.000000e+00 : f32
    %39 = vector.broadcast %cst_21 : f32 to vector<8x32xf32>
    %40 = arith.addf %39, %38 : vector<8x32xf32>
    %41 = arith.divf %39, %40 : vector<8x32xf32>
    %42 = arith.mulf %33, %12 : vector<8x32xf32>
    %43 = arith.mulf %27, %35 : vector<8x32xf32>
    %44 = arith.addf %42, %43 : vector<8x32xf32>
    %45 = math.tanh %44 : vector<8x32xf32>
    %46 = arith.mulf %41, %45 : vector<8x32xf32>
    %cst_22 = arith.constant 0.000000e+00 : f32
    %47 = vector.shape_cast %21 : vector<8x1xi1> to vector<8x1xi1>
    %48 = vector.broadcast %47 : vector<8x1xi1> to vector<8x32xi1>
    %49 = vector.broadcast %cst_22 : f32 to vector<8x32xf32>
    %50 = arith.select %48, %46, %49 : vector<8x32xi1>, vector<8x32xf32>
    %51 = vector.shape_cast %21 : vector<8x1xi1> to vector<8x1xi1>
    %52 = vector.broadcast %51 : vector<8x1xi1> to vector<8x32xi1>
    %53 = arith.select %52, %46, %12 : vector<8x32xi1>, vector<8x32xf32>
    %54 = vector.shape_cast %21 : vector<8x1xi1> to vector<8x1xi1>
    %55 = vector.broadcast %54 : vector<8x1xi1> to vector<8x32xi1>
    %56 = arith.select %55, %44, %12 : vector<8x32xi1>, vector<8x32xf32>
    %57 = arith.index_cast %c0_i32 : i32 to index
    %c0_23 = arith.constant 0 : index
    %c0_24 = arith.constant 0 : index
    %58 = vector.load %arg6[%57, %c0_23, %c0_24] : memref<8x8x64xf32, #tpu.memory_space<vmem>>, vector<1x8x32xf32>
    %59 = vector.shape_cast %58 : vector<1x8x32xf32> to vector<8x32xf32>
    %60 = vector.shape_cast %50 : vector<8x32xf32> to vector<1x8x32xf32>
    tpu.vector_store %arg6[%57, %c0_23, %c0_24], %60 {strides = array<i32>} : memref<8x8x64xf32, #tpu.memory_space<vmem>>, vector<1x8x32xf32>,
    %61 = arith.index_cast %13 : i32 to index
    %c0_25 = arith.constant 0 : index
    %c0_26 = arith.constant 0 : index
    %62 = vector.load %arg7[%61, %c0_25, %c0_26] : memref<8x8x256xf32, #tpu.memory_space<vmem>>, vector<1x8x256xf32>
    %63 = vector.shape_cast %62 : vector<1x8x256xf32> to vector<8x256xf32>
    %64 = vector.extract_strided_slice %63 {offsets = [0, 128], sizes = [8, 128], strides = [1, 1]} : vector<8x256xf32> to vector<8x128xf32>
    %cst_27 = arith.constant dense<0.000000e+00> : vector<8x128xf32>
    %65 = tpu.matmul %12, %11, %cst_27 {dimension_numbers = #tpu.dot_dimension_numbers<[1], [0], [0], [1], [0, 0, 1, 1], [], []>} : vector<8x32xf32>, vector<32x128xf32>, vector<8x128xf32> -> vector<8x128xf32>
    %66 = arith.addf %64, %65 : vector<8x128xf32>
    %67 = vector.broadcast %13 : i32 to vector<8x1xi32>
    %68 = arith.cmpi sgt, %9, %67 : vector<8x1xi32>
    %69 = vector.extract_strided_slice %66 {offsets = [0, 0], sizes = [8, 32], strides = [1, 1]} : vector<8x128xf32> to vector<8x32xf32>
    %70 = arith.negf %69 : vector<8x32xf32>
    %71 = math.exp %70 : vector<8x32xf32>
    %cst_28 = arith.constant 1.000000e+00 : f32
    %72 = vector.broadcast %cst_28 : f32 to vector<8x32xf32>
    %73 = arith.addf %72, %71 : vector<8x32xf32>
    %74 = arith.divf %72, %73 : vector<8x32xf32>
    %75 = vector.extract_strided_slice %66 {offsets = [0, 32], sizes = [8, 32], strides = [1, 1]} : vector<8x128xf32> to vector<8x32xf32>
    %76 = arith.negf %75 : vector<8x32xf32>
    %77 = math.exp %76 : vector<8x32xf32>
    %cst_29 = arith.constant 1.000000e+00 : f32
    %78 = vector.broadcast %cst_29 : f32 to vector<8x32xf32>
    %79 = arith.addf %78, %77 : vector<8x32xf32>
    %80 = arith.divf %78, %79 : vector<8x32xf32>
    %81 = vector.extract_strided_slice %66 {offsets = [0, 64], sizes = [8, 32], strides = [1, 1]} : vector<8x128xf32> to vector<8x32xf32>
    %82 = math.tanh %81 : vector<8x32xf32>
    %83 = vector.extract_strided_slice %66 {offsets = [0, 96], sizes = [8, 32], strides = [1, 1]} : vector<8x128xf32> to vector<8x32xf32>
    %84 = arith.negf %83 : vector<8x32xf32>
    %85 = math.exp %84 : vector<8x32xf32>
    %cst_30 = arith.constant 1.000000e+00 : f32
    %86 = vector.broadcast %cst_30 : f32 to vector<8x32xf32>
    %87 = arith.addf %86, %85 : vector<8x32xf32>
    %88 = arith.divf %86, %87 : vector<8x32xf32>
    %89 = arith.mulf %80, %12 : vector<8x32xf32>
    %90 = arith.mulf %74, %82 : vector<8x32xf32>
    %91 = arith.addf %89, %90 : vector<8x32xf32>
    %92 = math.tanh %91 : vector<8x32xf32>
    %93 = arith.mulf %88, %92 : vector<8x32xf32>
    %cst_31 = arith.constant 0.000000e+00 : f32
    %94 = vector.shape_cast %68 : vector<8x1xi1> to vector<8x1xi1>
    %95 = vector.broadcast %94 : vector<8x1xi1> to vector<8x32xi1>
    %96 = vector.broadcast %cst_31 : f32 to vector<8x32xf32>
    %97 = arith.select %95, %93, %96 : vector<8x32xi1>, vector<8x32xf32>
    %98 = vector.shape_cast %68 : vector<8x1xi1> to vector<8x1xi1>
    %99 = vector.broadcast %98 : vector<8x1xi1> to vector<8x32xi1>
    %100 = arith.select %99, %93, %12 : vector<8x32xi1>, vector<8x32xf32>
    %101 = vector.shape_cast %68 : vector<8x1xi1> to vector<8x1xi1>
    %102 = vector.broadcast %101 : vector<8x1xi1> to vector<8x32xi1>
    %103 = arith.select %102, %91, %12 : vector<8x32xi1>, vector<8x32xf32>
    %104 = arith.index_cast %13 : i32 to index
    %c0_32 = arith.constant 0 : index
    %c32 = arith.constant 32 : index
    %105 = vector.load %arg6[%104, %c0_32, %c32] : memref<8x8x64xf32, #tpu.memory_space<vmem>>, vector<1x8x32xf32>
    %106 = vector.shape_cast %105 : vector<1x8x32xf32> to vector<8x32xf32>
    %107 = vector.shape_cast %97 : vector<8x32xf32> to vector<1x8x32xf32>
    tpu.vector_store %arg6[%104, %c0_32, %c32], %107 {strides = array<i32>} : memref<8x8x64xf32, #tpu.memory_space<vmem>>, vector<1x8x32xf32>,
    %c1_i32 = arith.constant 1 : i32
    %c7_i32_33 = arith.constant 7 : i32
    %108 = arith.subi %c7_i32_33, %c1_i32 : i32
    %109 = arith.index_cast %c1_i32 : i32 to index
    %c0_34 = arith.constant 0 : index
    %c0_35 = arith.constant 0 : index
    %110 = vector.load %arg7[%109, %c0_34, %c0_35] : memref<8x8x256xf32, #tpu.memory_space<vmem>>, vector<1x8x256xf32>
    %111 = vector.shape_cast %110 : vector<1x8x256xf32> to vector<8x256xf32>
    %112 = vector.extract_strided_slice %111 {offsets = [0, 0], sizes = [8, 128], strides = [1, 1]} : vector<8x256xf32> to vector<8x128xf32>
    %cst_36 = arith.constant dense<0.000000e+00> : vector<8x128xf32>
    %113 = tpu.matmul %53, %10, %cst_36 {dimension_numbers = #tpu.dot_dimension_numbers<[1], [0], [0], [1], [0, 0, 1, 1], [], []>} : vector<8x32xf32>, vector<32x128xf32>, vector<8x128xf32> -> vector<8x128xf32>
    %114 = arith.addf %112, %113 : vector<8x128xf32>
    %115 = vector.broadcast %c1_i32 : i32 to vector<8x1xi32>
    %116 = arith.cmpi sgt, %9, %115 : vector<8x1xi32>
    %117 = vector.extract_strided_slice %114 {offsets = [0, 0], sizes = [8, 32], strides = [1, 1]} : vector<8x128xf32> to vector<8x32xf32>
    %118 = arith.negf %117 : vector<8x32xf32>
    %119 = math.exp %118 : vector<8x32xf32>
    %cst_37 = arith.constant 1.000000e+00 : f32
    %120 = vector.broadcast %cst_37 : f32 to vector<8x32xf32>
    %121 = arith.addf %120, %119 : vector<8x32xf32>
    %122 = arith.divf %120, %121 : vector<8x32xf32>
    %123 = vector.extract_strided_slice %114 {offsets = [0, 32], sizes = [8, 32], strides = [1, 1]} : vector<8x128xf32> to vector<8x32xf32>
    %124 = arith.negf %123 : vector<8x32xf32>
    %125 = math.exp %124 : vector<8x32xf32>
    %cst_38 = arith.constant 1.000000e+00 : f32
    %126 = vector.broadcast %cst_38 : f32 to vector<8x32xf32>
    %127 = arith.addf %126, %125 : vector<8x32xf32>
    %128 = arith.divf %126, %127 : vector<8x32xf32>
    %129 = vector.extract_strided_slice %114 {offsets = [0, 64], sizes = [8, 32], strides = [1, 1]} : vector<8x128xf32> to vector<8x32xf32>
    %130 = math.tanh %129 : vector<8x32xf32>
    %131 = vector.extract_strided_slice %114 {offsets = [0, 96], sizes = [8, 32], strides = [1, 1]} : vector<8x128xf32> to vector<8x32xf32>
    %132 = arith.negf %131 : vector<8x32xf32>
    %133 = math.exp %132 : vector<8x32xf32>
    %cst_39 = arith.constant 1.000000e+00 : f32
    %134 = vector.broadcast %cst_39 : f32 to vector<8x32xf32>
    %135 = arith.addf %134, %133 : vector<8x32xf32>
    %136 = arith.divf %134, %135 : vector<8x32xf32>
    %137 = arith.mulf %128, %56 : vector<8x32xf32>
    %138 = arith.mulf %122, %130 : vector<8x32xf32>
    %139 = arith.addf %137, %138 : vector<8x32xf32>
    %140 = math.tanh %139 : vector<8x32xf32>
    %141 = arith.mulf %136, %140 : vector<8x32xf32>
    %cst_40 = arith.constant 0.000000e+00 : f32
    %142 = vector.shape_cast %116 : vector<8x1xi1> to vector<8x1xi1>
    %143 = vector.broadcast %142 : vector<8x1xi1> to vector<8x32xi1>
    %144 = vector.broadcast %cst_40 : f32 to vector<8x32xf32>
    %145 = arith.select %143, %141, %144 : vector<8x32xi1>, vector<8x32xf32>
    %146 = vector.shape_cast %116 : vector<8x1xi1> to vector<8x1xi1>
    %147 = vector.broadcast %146 : vector<8x1xi1> to vector<8x32xi1>
    %148 = arith.select %147, %141, %53 : vector<8x32xi1>, vector<8x32xf32>
    %149 = vector.shape_cast %116 : vector<8x1xi1> to vector<8x1xi1>
    %150 = vector.broadcast %149 : vector<8x1xi1> to vector<8x32xi1>
    %151 = arith.select %150, %139, %56 : vector<8x32xi1>, vector<8x32xf32>
    %152 = arith.index_cast %c1_i32 : i32 to index
    %c0_41 = arith.constant 0 : index
    %c0_42 = arith.constant 0 : index
    %153 = vector.load %arg6[%152, %c0_41, %c0_42] : memref<8x8x64xf32, #tpu.memory_space<vmem>>, vector<1x8x32xf32>
    %154 = vector.shape_cast %153 : vector<1x8x32xf32> to vector<8x32xf32>
    %155 = vector.shape_cast %145 : vector<8x32xf32> to vector<1x8x32xf32>
    tpu.vector_store %arg6[%152, %c0_41, %c0_42], %155 {strides = array<i32>} : memref<8x8x64xf32, #tpu.memory_space<vmem>>, vector<1x8x32xf32>,
    %156 = arith.index_cast %108 : i32 to index
    %c0_43 = arith.constant 0 : index
    %c0_44 = arith.constant 0 : index
    %157 = vector.load %arg7[%156, %c0_43, %c0_44] : memref<8x8x256xf32, #tpu.memory_space<vmem>>, vector<1x8x256xf32>
    %158 = vector.shape_cast %157 : vector<1x8x256xf32> to vector<8x256xf32>
    %159 = vector.extract_strided_slice %158 {offsets = [0, 128], sizes = [8, 128], strides = [1, 1]} : vector<8x256xf32> to vector<8x128xf32>
    %cst_45 = arith.constant dense<0.000000e+00> : vector<8x128xf32>
    %160 = tpu.matmul %100, %11, %cst_45 {dimension_numbers = #tpu.dot_dimension_numbers<[1], [0], [0], [1], [0, 0, 1, 1], [], []>} : vector<8x32xf32>, vector<32x128xf32>, vector<8x128xf32> -> vector<8x128xf32>
    %161 = arith.addf %159, %160 : vector<8x128xf32>
    %162 = vector.broadcast %108 : i32 to vector<8x1xi32>
    %163 = arith.cmpi sgt, %9, %162 : vector<8x1xi32>
    %164 = vector.extract_strided_slice %161 {offsets = [0, 0], sizes = [8, 32], strides = [1, 1]} : vector<8x128xf32> to vector<8x32xf32>
    %165 = arith.negf %164 : vector<8x32xf32>
    %166 = math.exp %165 : vector<8x32xf32>
    %cst_46 = arith.constant 1.000000e+00 : f32
    %167 = vector.broadcast %cst_46 : f32 to vector<8x32xf32>
    %168 = arith.addf %167, %166 : vector<8x32xf32>
    %169 = arith.divf %167, %168 : vector<8x32xf32>
    %170 = vector.extract_strided_slice %161 {offsets = [0, 32], sizes = [8, 32], strides = [1, 1]} : vector<8x128xf32> to vector<8x32xf32>
    %171 = arith.negf %170 : vector<8x32xf32>
    %172 = math.exp %171 : vector<8x32xf32>
    %cst_47 = arith.constant 1.000000e+00 : f32
    %173 = vector.broadcast %cst_47 : f32 to vector<8x32xf32>
    %174 = arith.addf %173, %172 : vector<8x32xf32>
    %175 = arith.divf %173, %174 : vector<8x32xf32>
    %176 = vector.extract_strided_slice %161 {offsets = [0, 64], sizes = [8, 32], strides = [1, 1]} : vector<8x128xf32> to vector<8x32xf32>
    %177 = math.tanh %176 : vector<8x32xf32>
    %178 = vector.extract_strided_slice %161 {offsets = [0, 96], sizes = [8, 32], strides = [1, 1]} : vector<8x128xf32> to vector<8x32xf32>
    %179 = arith.negf %178 : vector<8x32xf32>
    %180 = math.exp %179 : vector<8x32xf32>
    %cst_48 = arith.constant 1.000000e+00 : f32
    %181 = vector.broadcast %cst_48 : f32 to vector<8x32xf32>
    %182 = arith.addf %181, %180 : vector<8x32xf32>
    %183 = arith.divf %181, %182 : vector<8x32xf32>
    %184 = arith.mulf %175, %103 : vector<8x32xf32>
    %185 = arith.mulf %169, %177 : vector<8x32xf32>
    %186 = arith.addf %184, %185 : vector<8x32xf32>
    %187 = math.tanh %186 : vector<8x32xf32>
    %188 = arith.mulf %183, %187 : vector<8x32xf32>
    %cst_49 = arith.constant 0.000000e+00 : f32
    %189 = vector.shape_cast %163 : vector<8x1xi1> to vector<8x1xi1>
    %190 = vector.broadcast %189 : vector<8x1xi1> to vector<8x32xi1>
    %191 = vector.broadcast %cst_49 : f32 to vector<8x32xf32>
    %192 = arith.select %190, %188, %191 : vector<8x32xi1>, vector<8x32xf32>
    %193 = vector.shape_cast %163 : vector<8x1xi1> to vector<8x1xi1>
    %194 = vector.broadcast %193 : vector<8x1xi1> to vector<8x32xi1>
    %195 = arith.select %194, %188, %100 : vector<8x32xi1>, vector<8x32xf32>
    %196 = vector.shape_cast %163 : vector<8x1xi1> to vector<8x1xi1>
    %197 = vector.broadcast %196 : vector<8x1xi1> to vector<8x32xi1>
    %198 = arith.select %197, %186, %103 : vector<8x32xi1>, vector<8x32xf32>
    %199 = arith.index_cast %108 : i32 to index
    %c0_50 = arith.constant 0 : index
    %c32_51 = arith.constant 32 : index
    %200 = vector.load %arg6[%199, %c0_50, %c32_51] : memref<8x8x64xf32, #tpu.memory_space<vmem>>, vector<1x8x32xf32>
    %201 = vector.shape_cast %200 : vector<1x8x32xf32> to vector<8x32xf32>
    %202 = vector.shape_cast %192 : vector<8x32xf32> to vector<1x8x32xf32>
    tpu.vector_store %arg6[%199, %c0_50, %c32_51], %202 {strides = array<i32>} : memref<8x8x64xf32, #tpu.memory_space<vmem>>, vector<1x8x32xf32>,
    %c2_i32 = arith.constant 2 : i32
    %c7_i32_52 = arith.constant 7 : i32
    %203 = arith.subi %c7_i32_52, %c2_i32 : i32
    %204 = arith.index_cast %c2_i32 : i32 to index
    %c0_53 = arith.constant 0 : index
    %c0_54 = arith.constant 0 : index
    %205 = vector.load %arg7[%204, %c0_53, %c0_54] : memref<8x8x256xf32, #tpu.memory_space<vmem>>, vector<1x8x256xf32>
    %206 = vector.shape_cast %205 : vector<1x8x256xf32> to vector<8x256xf32>
    %207 = vector.extract_strided_slice %206 {offsets = [0, 0], sizes = [8, 128], strides = [1, 1]} : vector<8x256xf32> to vector<8x128xf32>
    %cst_55 = arith.constant dense<0.000000e+00> : vector<8x128xf32>
    %208 = tpu.matmul %148, %10, %cst_55 {dimension_numbers = #tpu.dot_dimension_numbers<[1], [0], [0], [1], [0, 0, 1, 1], [], []>} : vector<8x32xf32>, vector<32x128xf32>, vector<8x128xf32> -> vector<8x128xf32>
    %209 = arith.addf %207, %208 : vector<8x128xf32>
    %210 = vector.broadcast %c2_i32 : i32 to vector<8x1xi32>
    %211 = arith.cmpi sgt, %9, %210 : vector<8x1xi32>
    %212 = vector.extract_strided_slice %209 {offsets = [0, 0], sizes = [8, 32], strides = [1, 1]} : vector<8x128xf32> to vector<8x32xf32>
    %213 = arith.negf %212 : vector<8x32xf32>
    %214 = math.exp %213 : vector<8x32xf32>
    %cst_56 = arith.constant 1.000000e+00 : f32
    %215 = vector.broadcast %cst_56 : f32 to vector<8x32xf32>
    %216 = arith.addf %215, %214 : vector<8x32xf32>
    %217 = arith.divf %215, %216 : vector<8x32xf32>
    %218 = vector.extract_strided_slice %209 {offsets = [0, 32], sizes = [8, 32], strides = [1, 1]} : vector<8x128xf32> to vector<8x32xf32>
    %219 = arith.negf %218 : vector<8x32xf32>
    %220 = math.exp %219 : vector<8x32xf32>
    %cst_57 = arith.constant 1.000000e+00 : f32
    %221 = vector.broadcast %cst_57 : f32 to vector<8x32xf32>
    %222 = arith.addf %221, %220 : vector<8x32xf32>
    %223 = arith.divf %221, %222 : vector<8x32xf32>
    %224 = vector.extract_strided_slice %209 {offsets = [0, 64], sizes = [8, 32], strides = [1, 1]} : vector<8x128xf32> to vector<8x32xf32>
    %225 = math.tanh %224 : vector<8x32xf32>
    %226 = vector.extract_strided_slice %209 {offsets = [0, 96], sizes = [8, 32], strides = [1, 1]} : vector<8x128xf32> to vector<8x32xf32>
    %227 = arith.negf %226 : vector<8x32xf32>
    %228 = math.exp %227 : vector<8x32xf32>
    %cst_58 = arith.constant 1.000000e+00 : f32
    %229 = vector.broadcast %cst_58 : f32 to vector<8x32xf32>
    %230 = arith.addf %229, %228 : vector<8x32xf32>
    %231 = arith.divf %229, %230 : vector<8x32xf32>
    %232 = arith.mulf %223, %151 : vector<8x32xf32>
    %233 = arith.mulf %217, %225 : vector<8x32xf32>
    %234 = arith.addf %232, %233 : vector<8x32xf32>
    %235 = math.tanh %234 : vector<8x32xf32>
    %236 = arith.mulf %231, %235 : vector<8x32xf32>
    %cst_59 = arith.constant 0.000000e+00 : f32
    %237 = vector.shape_cast %211 : vector<8x1xi1> to vector<8x1xi1>
    %238 = vector.broadcast %237 : vector<8x1xi1> to vector<8x32xi1>
    %239 = vector.broadcast %cst_59 : f32 to vector<8x32xf32>
    %240 = arith.select %238, %236, %239 : vector<8x32xi1>, vector<8x32xf32>
    %241 = vector.shape_cast %211 : vector<8x1xi1> to vector<8x1xi1>
    %242 = vector.broadcast %241 : vector<8x1xi1> to vector<8x32xi1>
    %243 = arith.select %242, %236, %148 : vector<8x32xi1>, vector<8x32xf32>
    %244 = vector.shape_cast %211 : vector<8x1xi1> to vector<8x1xi1>
    %245 = vector.broadcast %244 : vector<8x1xi1> to vector<8x32xi1>
    %246 = arith.select %245, %234, %151 : vector<8x32xi1>, vector<8x32xf32>
    %247 = arith.index_cast %c2_i32 : i32 to index
    %c0_60 = arith.constant 0 : index
    %c0_61 = arith.constant 0 : index
    %248 = vector.load %arg6[%247, %c0_60, %c0_61] : memref<8x8x64xf32, #tpu.memory_space<vmem>>, vector<1x8x32xf32>
    %249 = vector.shape_cast %248 : vector<1x8x32xf32> to vector<8x32xf32>
    %250 = vector.shape_cast %240 : vector<8x32xf32> to vector<1x8x32xf32>
    tpu.vector_store %arg6[%247, %c0_60, %c0_61], %250 {strides = array<i32>} : memref<8x8x64xf32, #tpu.memory_space<vmem>>, vector<1x8x32xf32>,
    %251 = arith.index_cast %203 : i32 to index
    %c0_62 = arith.constant 0 : index
    %c0_63 = arith.constant 0 : index
    %252 = vector.load %arg7[%251, %c0_62, %c0_63] : memref<8x8x256xf32, #tpu.memory_space<vmem>>, vector<1x8x256xf32>
    %253 = vector.shape_cast %252 : vector<1x8x256xf32> to vector<8x256xf32>
    %254 = vector.extract_strided_slice %253 {offsets = [0, 128], sizes = [8, 128], strides = [1, 1]} : vector<8x256xf32> to vector<8x128xf32>
    %cst_64 = arith.constant dense<0.000000e+00> : vector<8x128xf32>
    %255 = tpu.matmul %195, %11, %cst_64 {dimension_numbers = #tpu.dot_dimension_numbers<[1], [0], [0], [1], [0, 0, 1, 1], [], []>} : vector<8x32xf32>, vector<32x128xf32>, vector<8x128xf32> -> vector<8x128xf32>
    %256 = arith.addf %254, %255 : vector<8x128xf32>
    %257 = vector.broadcast %203 : i32 to vector<8x1xi32>
    %258 = arith.cmpi sgt, %9, %257 : vector<8x1xi32>
    %259 = vector.extract_strided_slice %256 {offsets = [0, 0], sizes = [8, 32], strides = [1, 1]} : vector<8x128xf32> to vector<8x32xf32>
    %260 = arith.negf %259 : vector<8x32xf32>
    %261 = math.exp %260 : vector<8x32xf32>
    %cst_65 = arith.constant 1.000000e+00 : f32
    %262 = vector.broadcast %cst_65 : f32 to vector<8x32xf32>
    %263 = arith.addf %262, %261 : vector<8x32xf32>
    %264 = arith.divf %262, %263 : vector<8x32xf32>
    %265 = vector.extract_strided_slice %256 {offsets = [0, 32], sizes = [8, 32], strides = [1, 1]} : vector<8x128xf32> to vector<8x32xf32>
    %266 = arith.negf %265 : vector<8x32xf32>
    %267 = math.exp %266 : vector<8x32xf32>
    %cst_66 = arith.constant 1.000000e+00 : f32
    %268 = vector.broadcast %cst_66 : f32 to vector<8x32xf32>
    %269 = arith.addf %268, %267 : vector<8x32xf32>
    %270 = arith.divf %268, %269 : vector<8x32xf32>
    %271 = vector.extract_strided_slice %256 {offsets = [0, 64], sizes = [8, 32], strides = [1, 1]} : vector<8x128xf32> to vector<8x32xf32>
    %272 = math.tanh %271 : vector<8x32xf32>
    %273 = vector.extract_strided_slice %256 {offsets = [0, 96], sizes = [8, 32], strides = [1, 1]} : vector<8x128xf32> to vector<8x32xf32>
    %274 = arith.negf %273 : vector<8x32xf32>
    %275 = math.exp %274 : vector<8x32xf32>
    %cst_67 = arith.constant 1.000000e+00 : f32
    %276 = vector.broadcast %cst_67 : f32 to vector<8x32xf32>
    %277 = arith.addf %276, %275 : vector<8x32xf32>
    %278 = arith.divf %276, %277 : vector<8x32xf32>
    %279 = arith.mulf %270, %198 : vector<8x32xf32>
    %280 = arith.mulf %264, %272 : vector<8x32xf32>
    %281 = arith.addf %279, %280 : vector<8x32xf32>
    %282 = math.tanh %281 : vector<8x32xf32>
    %283 = arith.mulf %278, %282 : vector<8x32xf32>
    %cst_68 = arith.constant 0.000000e+00 : f32
    %284 = vector.shape_cast %258 : vector<8x1xi1> to vector<8x1xi1>
    %285 = vector.broadcast %284 : vector<8x1xi1> to vector<8x32xi1>
    %286 = vector.broadcast %cst_68 : f32 to vector<8x32xf32>
    %287 = arith.select %285, %283, %286 : vector<8x32xi1>, vector<8x32xf32>
    %288 = vector.shape_cast %258 : vector<8x1xi1> to vector<8x1xi1>
    %289 = vector.broadcast %288 : vector<8x1xi1> to vector<8x32xi1>
    %290 = arith.select %289, %283, %195 : vector<8x32xi1>, vector<8x32xf32>
    %291 = vector.shape_cast %258 : vector<8x1xi1> to vector<8x1xi1>
    %292 = vector.broadcast %291 : vector<8x1xi1> to vector<8x32xi1>
    %293 = arith.select %292, %281, %198 : vector<8x32xi1>, vector<8x32xf32>
    %294 = arith.index_cast %203 : i32 to index
    %c0_69 = arith.constant 0 : index
    %c32_70 = arith.constant 32 : index
    %295 = vector.load %arg6[%294, %c0_69, %c32_70] : memref<8x8x64xf32, #tpu.memory_space<vmem>>, vector<1x8x32xf32>
    %296 = vector.shape_cast %295 : vector<1x8x32xf32> to vector<8x32xf32>
    %297 = vector.shape_cast %287 : vector<8x32xf32> to vector<1x8x32xf32>
    tpu.vector_store %arg6[%294, %c0_69, %c32_70], %297 {strides = array<i32>} : memref<8x8x64xf32, #tpu.memory_space<vmem>>, vector<1x8x32xf32>,
    %c3_i32 = arith.constant 3 : i32
    %c7_i32_71 = arith.constant 7 : i32
    %298 = arith.subi %c7_i32_71, %c3_i32 : i32
    %299 = arith.index_cast %c3_i32 : i32 to index
    %c0_72 = arith.constant 0 : index
    %c0_73 = arith.constant 0 : index
    %300 = vector.load %arg7[%299, %c0_72, %c0_73] : memref<8x8x256xf32, #tpu.memory_space<vmem>>, vector<1x8x256xf32>
    %301 = vector.shape_cast %300 : vector<1x8x256xf32> to vector<8x256xf32>
    %302 = vector.extract_strided_slice %301 {offsets = [0, 0], sizes = [8, 128], strides = [1, 1]} : vector<8x256xf32> to vector<8x128xf32>
    %cst_74 = arith.constant dense<0.000000e+00> : vector<8x128xf32>
    %303 = tpu.matmul %243, %10, %cst_74 {dimension_numbers = #tpu.dot_dimension_numbers<[1], [0], [0], [1], [0, 0, 1, 1], [], []>} : vector<8x32xf32>, vector<32x128xf32>, vector<8x128xf32> -> vector<8x128xf32>
    %304 = arith.addf %302, %303 : vector<8x128xf32>
    %305 = vector.broadcast %c3_i32 : i32 to vector<8x1xi32>
    %306 = arith.cmpi sgt, %9, %305 : vector<8x1xi32>
    %307 = vector.extract_strided_slice %304 {offsets = [0, 0], sizes = [8, 32], strides = [1, 1]} : vector<8x128xf32> to vector<8x32xf32>
    %308 = arith.negf %307 : vector<8x32xf32>
    %309 = math.exp %308 : vector<8x32xf32>
    %cst_75 = arith.constant 1.000000e+00 : f32
    %310 = vector.broadcast %cst_75 : f32 to vector<8x32xf32>
    %311 = arith.addf %310, %309 : vector<8x32xf32>
    %312 = arith.divf %310, %311 : vector<8x32xf32>
    %313 = vector.extract_strided_slice %304 {offsets = [0, 32], sizes = [8, 32], strides = [1, 1]} : vector<8x128xf32> to vector<8x32xf32>
    %314 = arith.negf %313 : vector<8x32xf32>
    %315 = math.exp %314 : vector<8x32xf32>
    %cst_76 = arith.constant 1.000000e+00 : f32
    %316 = vector.broadcast %cst_76 : f32 to vector<8x32xf32>
    %317 = arith.addf %316, %315 : vector<8x32xf32>
    %318 = arith.divf %316, %317 : vector<8x32xf32>
    %319 = vector.extract_strided_slice %304 {offsets = [0, 64], sizes = [8, 32], strides = [1, 1]} : vector<8x128xf32> to vector<8x32xf32>
    %320 = math.tanh %319 : vector<8x32xf32>
    %321 = vector.extract_strided_slice %304 {offsets = [0, 96], sizes = [8, 32], strides = [1, 1]} : vector<8x128xf32> to vector<8x32xf32>
    %322 = arith.negf %321 : vector<8x32xf32>
    %323 = math.exp %322 : vector<8x32xf32>
    %cst_77 = arith.constant 1.000000e+00 : f32
    %324 = vector.broadcast %cst_77 : f32 to vector<8x32xf32>
    %325 = arith.addf %324, %323 : vector<8x32xf32>
    %326 = arith.divf %324, %325 : vector<8x32xf32>
    %327 = arith.mulf %318, %246 : vector<8x32xf32>
    %328 = arith.mulf %312, %320 : vector<8x32xf32>
    %329 = arith.addf %327, %328 : vector<8x32xf32>
    %330 = math.tanh %329 : vector<8x32xf32>
    %331 = arith.mulf %326, %330 : vector<8x32xf32>
    %cst_78 = arith.constant 0.000000e+00 : f32
    %332 = vector.shape_cast %306 : vector<8x1xi1> to vector<8x1xi1>
    %333 = vector.broadcast %332 : vector<8x1xi1> to vector<8x32xi1>
    %334 = vector.broadcast %cst_78 : f32 to vector<8x32xf32>
    %335 = arith.select %333, %331, %334 : vector<8x32xi1>, vector<8x32xf32>
    %336 = vector.shape_cast %306 : vector<8x1xi1> to vector<8x1xi1>
    %337 = vector.broadcast %336 : vector<8x1xi1> to vector<8x32xi1>
    %338 = arith.select %337, %331, %243 : vector<8x32xi1>, vector<8x32xf32>
    %339 = vector.shape_cast %306 : vector<8x1xi1> to vector<8x1xi1>
    %340 = vector.broadcast %339 : vector<8x1xi1> to vector<8x32xi1>
    %341 = arith.select %340, %329, %246 : vector<8x32xi1>, vector<8x32xf32>
    %342 = arith.index_cast %c3_i32 : i32 to index
    %c0_79 = arith.constant 0 : index
    %c0_80 = arith.constant 0 : index
    %343 = vector.load %arg6[%342, %c0_79, %c0_80] : memref<8x8x64xf32, #tpu.memory_space<vmem>>, vector<1x8x32xf32>
    %344 = vector.shape_cast %343 : vector<1x8x32xf32> to vector<8x32xf32>
    %345 = vector.shape_cast %335 : vector<8x32xf32> to vector<1x8x32xf32>
    tpu.vector_store %arg6[%342, %c0_79, %c0_80], %345 {strides = array<i32>} : memref<8x8x64xf32, #tpu.memory_space<vmem>>, vector<1x8x32xf32>,
    %346 = arith.index_cast %298 : i32 to index
    %c0_81 = arith.constant 0 : index
    %c0_82 = arith.constant 0 : index
    %347 = vector.load %arg7[%346, %c0_81, %c0_82] : memref<8x8x256xf32, #tpu.memory_space<vmem>>, vector<1x8x256xf32>
    %348 = vector.shape_cast %347 : vector<1x8x256xf32> to vector<8x256xf32>
    %349 = vector.extract_strided_slice %348 {offsets = [0, 128], sizes = [8, 128], strides = [1, 1]} : vector<8x256xf32> to vector<8x128xf32>
    %cst_83 = arith.constant dense<0.000000e+00> : vector<8x128xf32>
    %350 = tpu.matmul %290, %11, %cst_83 {dimension_numbers = #tpu.dot_dimension_numbers<[1], [0], [0], [1], [0, 0, 1, 1], [], []>} : vector<8x32xf32>, vector<32x128xf32>, vector<8x128xf32> -> vector<8x128xf32>
    %351 = arith.addf %349, %350 : vector<8x128xf32>
    %352 = vector.broadcast %298 : i32 to vector<8x1xi32>
    %353 = arith.cmpi sgt, %9, %352 : vector<8x1xi32>
    %354 = vector.extract_strided_slice %351 {offsets = [0, 0], sizes = [8, 32], strides = [1, 1]} : vector<8x128xf32> to vector<8x32xf32>
    %355 = arith.negf %354 : vector<8x32xf32>
    %356 = math.exp %355 : vector<8x32xf32>
    %cst_84 = arith.constant 1.000000e+00 : f32
    %357 = vector.broadcast %cst_84 : f32 to vector<8x32xf32>
    %358 = arith.addf %357, %356 : vector<8x32xf32>
    %359 = arith.divf %357, %358 : vector<8x32xf32>
    %360 = vector.extract_strided_slice %351 {offsets = [0, 32], sizes = [8, 32], strides = [1, 1]} : vector<8x128xf32> to vector<8x32xf32>
    %361 = arith.negf %360 : vector<8x32xf32>
    %362 = math.exp %361 : vector<8x32xf32>
    %cst_85 = arith.constant 1.000000e+00 : f32
    %363 = vector.broadcast %cst_85 : f32 to vector<8x32xf32>
    %364 = arith.addf %363, %362 : vector<8x32xf32>
    %365 = arith.divf %363, %364 : vector<8x32xf32>
    %366 = vector.extract_strided_slice %351 {offsets = [0, 64], sizes = [8, 32], strides = [1, 1]} : vector<8x128xf32> to vector<8x32xf32>
    %367 = math.tanh %366 : vector<8x32xf32>
    %368 = vector.extract_strided_slice %351 {offsets = [0, 96], sizes = [8, 32], strides = [1, 1]} : vector<8x128xf32> to vector<8x32xf32>
    %369 = arith.negf %368 : vector<8x32xf32>
    %370 = math.exp %369 : vector<8x32xf32>
    %cst_86 = arith.constant 1.000000e+00 : f32
    %371 = vector.broadcast %cst_86 : f32 to vector<8x32xf32>
    %372 = arith.addf %371, %370 : vector<8x32xf32>
    %373 = arith.divf %371, %372 : vector<8x32xf32>
    %374 = arith.mulf %365, %293 : vector<8x32xf32>
    %375 = arith.mulf %359, %367 : vector<8x32xf32>
    %376 = arith.addf %374, %375 : vector<8x32xf32>
    %377 = math.tanh %376 : vector<8x32xf32>
    %378 = arith.mulf %373, %377 : vector<8x32xf32>
    %cst_87 = arith.constant 0.000000e+00 : f32
    %379 = vector.shape_cast %353 : vector<8x1xi1> to vector<8x1xi1>
    %380 = vector.broadcast %379 : vector<8x1xi1> to vector<8x32xi1>
    %381 = vector.broadcast %cst_87 : f32 to vector<8x32xf32>
    %382 = arith.select %380, %378, %381 : vector<8x32xi1>, vector<8x32xf32>
    %383 = vector.shape_cast %353 : vector<8x1xi1> to vector<8x1xi1>
    %384 = vector.broadcast %383 : vector<8x1xi1> to vector<8x32xi1>
    %385 = arith.select %384, %378, %290 : vector<8x32xi1>, vector<8x32xf32>
    %386 = vector.shape_cast %353 : vector<8x1xi1> to vector<8x1xi1>
    %387 = vector.broadcast %386 : vector<8x1xi1> to vector<8x32xi1>
    %388 = arith.select %387, %376, %293 : vector<8x32xi1>, vector<8x32xf32>
    %389 = arith.index_cast %298 : i32 to index
    %c0_88 = arith.constant 0 : index
    %c32_89 = arith.constant 32 : index
    %390 = vector.load %arg6[%389, %c0_88, %c32_89] : memref<8x8x64xf32, #tpu.memory_space<vmem>>, vector<1x8x32xf32>
    %391 = vector.shape_cast %390 : vector<1x8x32xf32> to vector<8x32xf32>
    %392 = vector.shape_cast %382 : vector<8x32xf32> to vector<1x8x32xf32>
    tpu.vector_store %arg6[%389, %c0_88, %c32_89], %392 {strides = array<i32>} : memref<8x8x64xf32, #tpu.memory_space<vmem>>, vector<1x8x32xf32>,
    %c4_i32 = arith.constant 4 : i32
    %c7_i32_90 = arith.constant 7 : i32
    %393 = arith.subi %c7_i32_90, %c4_i32 : i32
    %394 = arith.index_cast %c4_i32 : i32 to index
    %c0_91 = arith.constant 0 : index
    %c0_92 = arith.constant 0 : index
    %395 = vector.load %arg7[%394, %c0_91, %c0_92] : memref<8x8x256xf32, #tpu.memory_space<vmem>>, vector<1x8x256xf32>
    %396 = vector.shape_cast %395 : vector<1x8x256xf32> to vector<8x256xf32>
    %397 = vector.extract_strided_slice %396 {offsets = [0, 0], sizes = [8, 128], strides = [1, 1]} : vector<8x256xf32> to vector<8x128xf32>
    %cst_93 = arith.constant dense<0.000000e+00> : vector<8x128xf32>
    %398 = tpu.matmul %338, %10, %cst_93 {dimension_numbers = #tpu.dot_dimension_numbers<[1], [0], [0], [1], [0, 0, 1, 1], [], []>} : vector<8x32xf32>, vector<32x128xf32>, vector<8x128xf32> -> vector<8x128xf32>
    %399 = arith.addf %397, %398 : vector<8x128xf32>
    %400 = vector.broadcast %c4_i32 : i32 to vector<8x1xi32>
    %401 = arith.cmpi sgt, %9, %400 : vector<8x1xi32>
    %402 = vector.extract_strided_slice %399 {offsets = [0, 0], sizes = [8, 32], strides = [1, 1]} : vector<8x128xf32> to vector<8x32xf32>
    %403 = arith.negf %402 : vector<8x32xf32>
    %404 = math.exp %403 : vector<8x32xf32>
    %cst_94 = arith.constant 1.000000e+00 : f32
    %405 = vector.broadcast %cst_94 : f32 to vector<8x32xf32>
    %406 = arith.addf %405, %404 : vector<8x32xf32>
    %407 = arith.divf %405, %406 : vector<8x32xf32>
    %408 = vector.extract_strided_slice %399 {offsets = [0, 32], sizes = [8, 32], strides = [1, 1]} : vector<8x128xf32> to vector<8x32xf32>
    %409 = arith.negf %408 : vector<8x32xf32>
    %410 = math.exp %409 : vector<8x32xf32>
    %cst_95 = arith.constant 1.000000e+00 : f32
    %411 = vector.broadcast %cst_95 : f32 to vector<8x32xf32>
    %412 = arith.addf %411, %410 : vector<8x32xf32>
    %413 = arith.divf %411, %412 : vector<8x32xf32>
    %414 = vector.extract_strided_slice %399 {offsets = [0, 64], sizes = [8, 32], strides = [1, 1]} : vector<8x128xf32> to vector<8x32xf32>
    %415 = math.tanh %414 : vector<8x32xf32>
    %416 = vector.extract_strided_slice %399 {offsets = [0, 96], sizes = [8, 32], strides = [1, 1]} : vector<8x128xf32> to vector<8x32xf32>
    %417 = arith.negf %416 : vector<8x32xf32>
    %418 = math.exp %417 : vector<8x32xf32>
    %cst_96 = arith.constant 1.000000e+00 : f32
    %419 = vector.broadcast %cst_96 : f32 to vector<8x32xf32>
    %420 = arith.addf %419, %418 : vector<8x32xf32>
    %421 = arith.divf %419, %420 : vector<8x32xf32>
    %422 = arith.mulf %413, %341 : vector<8x32xf32>
    %423 = arith.mulf %407, %415 : vector<8x32xf32>
    %424 = arith.addf %422, %423 : vector<8x32xf32>
    %425 = math.tanh %424 : vector<8x32xf32>
    %426 = arith.mulf %421, %425 : vector<8x32xf32>
    %cst_97 = arith.constant 0.000000e+00 : f32
    %427 = vector.shape_cast %401 : vector<8x1xi1> to vector<8x1xi1>
    %428 = vector.broadcast %427 : vector<8x1xi1> to vector<8x32xi1>
    %429 = vector.broadcast %cst_97 : f32 to vector<8x32xf32>
    %430 = arith.select %428, %426, %429 : vector<8x32xi1>, vector<8x32xf32>
    %431 = vector.shape_cast %401 : vector<8x1xi1> to vector<8x1xi1>
    %432 = vector.broadcast %431 : vector<8x1xi1> to vector<8x32xi1>
    %433 = arith.select %432, %426, %338 : vector<8x32xi1>, vector<8x32xf32>
    %434 = vector.shape_cast %401 : vector<8x1xi1> to vector<8x1xi1>
    %435 = vector.broadcast %434 : vector<8x1xi1> to vector<8x32xi1>
    %436 = arith.select %435, %424, %341 : vector<8x32xi1>, vector<8x32xf32>
    %437 = arith.index_cast %c4_i32 : i32 to index
    %c0_98 = arith.constant 0 : index
    %c0_99 = arith.constant 0 : index
    %438 = vector.load %arg6[%437, %c0_98, %c0_99] : memref<8x8x64xf32, #tpu.memory_space<vmem>>, vector<1x8x32xf32>
    %439 = vector.shape_cast %438 : vector<1x8x32xf32> to vector<8x32xf32>
    %440 = vector.shape_cast %430 : vector<8x32xf32> to vector<1x8x32xf32>
    tpu.vector_store %arg6[%437, %c0_98, %c0_99], %440 {strides = array<i32>} : memref<8x8x64xf32, #tpu.memory_space<vmem>>, vector<1x8x32xf32>,
    %441 = arith.index_cast %393 : i32 to index
    %c0_100 = arith.constant 0 : index
    %c0_101 = arith.constant 0 : index
    %442 = vector.load %arg7[%441, %c0_100, %c0_101] : memref<8x8x256xf32, #tpu.memory_space<vmem>>, vector<1x8x256xf32>
    %443 = vector.shape_cast %442 : vector<1x8x256xf32> to vector<8x256xf32>
    %444 = vector.extract_strided_slice %443 {offsets = [0, 128], sizes = [8, 128], strides = [1, 1]} : vector<8x256xf32> to vector<8x128xf32>
    %cst_102 = arith.constant dense<0.000000e+00> : vector<8x128xf32>
    %445 = tpu.matmul %385, %11, %cst_102 {dimension_numbers = #tpu.dot_dimension_numbers<[1], [0], [0], [1], [0, 0, 1, 1], [], []>} : vector<8x32xf32>, vector<32x128xf32>, vector<8x128xf32> -> vector<8x128xf32>
    %446 = arith.addf %444, %445 : vector<8x128xf32>
    %447 = vector.broadcast %393 : i32 to vector<8x1xi32>
    %448 = arith.cmpi sgt, %9, %447 : vector<8x1xi32>
    %449 = vector.extract_strided_slice %446 {offsets = [0, 0], sizes = [8, 32], strides = [1, 1]} : vector<8x128xf32> to vector<8x32xf32>
    %450 = arith.negf %449 : vector<8x32xf32>
    %451 = math.exp %450 : vector<8x32xf32>
    %cst_103 = arith.constant 1.000000e+00 : f32
    %452 = vector.broadcast %cst_103 : f32 to vector<8x32xf32>
    %453 = arith.addf %452, %451 : vector<8x32xf32>
    %454 = arith.divf %452, %453 : vector<8x32xf32>
    %455 = vector.extract_strided_slice %446 {offsets = [0, 32], sizes = [8, 32], strides = [1, 1]} : vector<8x128xf32> to vector<8x32xf32>
    %456 = arith.negf %455 : vector<8x32xf32>
    %457 = math.exp %456 : vector<8x32xf32>
    %cst_104 = arith.constant 1.000000e+00 : f32
    %458 = vector.broadcast %cst_104 : f32 to vector<8x32xf32>
    %459 = arith.addf %458, %457 : vector<8x32xf32>
    %460 = arith.divf %458, %459 : vector<8x32xf32>
    %461 = vector.extract_strided_slice %446 {offsets = [0, 64], sizes = [8, 32], strides = [1, 1]} : vector<8x128xf32> to vector<8x32xf32>
    %462 = math.tanh %461 : vector<8x32xf32>
    %463 = vector.extract_strided_slice %446 {offsets = [0, 96], sizes = [8, 32], strides = [1, 1]} : vector<8x128xf32> to vector<8x32xf32>
    %464 = arith.negf %463 : vector<8x32xf32>
    %465 = math.exp %464 : vector<8x32xf32>
    %cst_105 = arith.constant 1.000000e+00 : f32
    %466 = vector.broadcast %cst_105 : f32 to vector<8x32xf32>
    %467 = arith.addf %466, %465 : vector<8x32xf32>
    %468 = arith.divf %466, %467 : vector<8x32xf32>
    %469 = arith.mulf %460, %388 : vector<8x32xf32>
    %470 = arith.mulf %454, %462 : vector<8x32xf32>
    %471 = arith.addf %469, %470 : vector<8x32xf32>
    %472 = math.tanh %471 : vector<8x32xf32>
    %473 = arith.mulf %468, %472 : vector<8x32xf32>
    %cst_106 = arith.constant 0.000000e+00 : f32
    %474 = vector.shape_cast %448 : vector<8x1xi1> to vector<8x1xi1>
    %475 = vector.broadcast %474 : vector<8x1xi1> to vector<8x32xi1>
    %476 = vector.broadcast %cst_106 : f32 to vector<8x32xf32>
    %477 = arith.select %475, %473, %476 : vector<8x32xi1>, vector<8x32xf32>
    %478 = vector.shape_cast %448 : vector<8x1xi1> to vector<8x1xi1>
    %479 = vector.broadcast %478 : vector<8x1xi1> to vector<8x32xi1>
    %480 = arith.select %479, %473, %385 : vector<8x32xi1>, vector<8x32xf32>
    %481 = vector.shape_cast %448 : vector<8x1xi1> to vector<8x1xi1>
    %482 = vector.broadcast %481 : vector<8x1xi1> to vector<8x32xi1>
    %483 = arith.select %482, %471, %388 : vector<8x32xi1>, vector<8x32xf32>
    %484 = arith.index_cast %393 : i32 to index
    %c0_107 = arith.constant 0 : index
    %c32_108 = arith.constant 32 : index
    %485 = vector.load %arg6[%484, %c0_107, %c32_108] : memref<8x8x64xf32, #tpu.memory_space<vmem>>, vector<1x8x32xf32>
    %486 = vector.shape_cast %485 : vector<1x8x32xf32> to vector<8x32xf32>
    %487 = vector.shape_cast %477 : vector<8x32xf32> to vector<1x8x32xf32>
    tpu.vector_store %arg6[%484, %c0_107, %c32_108], %487 {strides = array<i32>} : memref<8x8x64xf32, #tpu.memory_space<vmem>>, vector<1x8x32xf32>,
    %c5_i32 = arith.constant 5 : i32
    %c7_i32_109 = arith.constant 7 : i32
    %488 = arith.subi %c7_i32_109, %c5_i32 : i32
    %489 = arith.index_cast %c5_i32 : i32 to index
    %c0_110 = arith.constant 0 : index
    %c0_111 = arith.constant 0 : index
    %490 = vector.load %arg7[%489, %c0_110, %c0_111] : memref<8x8x256xf32, #tpu.memory_space<vmem>>, vector<1x8x256xf32>
    %491 = vector.shape_cast %490 : vector<1x8x256xf32> to vector<8x256xf32>
    %492 = vector.extract_strided_slice %491 {offsets = [0, 0], sizes = [8, 128], strides = [1, 1]} : vector<8x256xf32> to vector<8x128xf32>
    %cst_112 = arith.constant dense<0.000000e+00> : vector<8x128xf32>
    %493 = tpu.matmul %433, %10, %cst_112 {dimension_numbers = #tpu.dot_dimension_numbers<[1], [0], [0], [1], [0, 0, 1, 1], [], []>} : vector<8x32xf32>, vector<32x128xf32>, vector<8x128xf32> -> vector<8x128xf32>
    %494 = arith.addf %492, %493 : vector<8x128xf32>
    %495 = vector.broadcast %c5_i32 : i32 to vector<8x1xi32>
    %496 = arith.cmpi sgt, %9, %495 : vector<8x1xi32>
    %497 = vector.extract_strided_slice %494 {offsets = [0, 0], sizes = [8, 32], strides = [1, 1]} : vector<8x128xf32> to vector<8x32xf32>
    %498 = arith.negf %497 : vector<8x32xf32>
    %499 = math.exp %498 : vector<8x32xf32>
    %cst_113 = arith.constant 1.000000e+00 : f32
    %500 = vector.broadcast %cst_113 : f32 to vector<8x32xf32>
    %501 = arith.addf %500, %499 : vector<8x32xf32>
    %502 = arith.divf %500, %501 : vector<8x32xf32>
    %503 = vector.extract_strided_slice %494 {offsets = [0, 32], sizes = [8, 32], strides = [1, 1]} : vector<8x128xf32> to vector<8x32xf32>
    %504 = arith.negf %503 : vector<8x32xf32>
    %505 = math.exp %504 : vector<8x32xf32>
    %cst_114 = arith.constant 1.000000e+00 : f32
    %506 = vector.broadcast %cst_114 : f32 to vector<8x32xf32>
    %507 = arith.addf %506, %505 : vector<8x32xf32>
    %508 = arith.divf %506, %507 : vector<8x32xf32>
    %509 = vector.extract_strided_slice %494 {offsets = [0, 64], sizes = [8, 32], strides = [1, 1]} : vector<8x128xf32> to vector<8x32xf32>
    %510 = math.tanh %509 : vector<8x32xf32>
    %511 = vector.extract_strided_slice %494 {offsets = [0, 96], sizes = [8, 32], strides = [1, 1]} : vector<8x128xf32> to vector<8x32xf32>
    %512 = arith.negf %511 : vector<8x32xf32>
    %513 = math.exp %512 : vector<8x32xf32>
    %cst_115 = arith.constant 1.000000e+00 : f32
    %514 = vector.broadcast %cst_115 : f32 to vector<8x32xf32>
    %515 = arith.addf %514, %513 : vector<8x32xf32>
    %516 = arith.divf %514, %515 : vector<8x32xf32>
    %517 = arith.mulf %508, %436 : vector<8x32xf32>
    %518 = arith.mulf %502, %510 : vector<8x32xf32>
    %519 = arith.addf %517, %518 : vector<8x32xf32>
    %520 = math.tanh %519 : vector<8x32xf32>
    %521 = arith.mulf %516, %520 : vector<8x32xf32>
    %cst_116 = arith.constant 0.000000e+00 : f32
    %522 = vector.shape_cast %496 : vector<8x1xi1> to vector<8x1xi1>
    %523 = vector.broadcast %522 : vector<8x1xi1> to vector<8x32xi1>
    %524 = vector.broadcast %cst_116 : f32 to vector<8x32xf32>
    %525 = arith.select %523, %521, %524 : vector<8x32xi1>, vector<8x32xf32>
    %526 = vector.shape_cast %496 : vector<8x1xi1> to vector<8x1xi1>
    %527 = vector.broadcast %526 : vector<8x1xi1> to vector<8x32xi1>
    %528 = arith.select %527, %521, %433 : vector<8x32xi1>, vector<8x32xf32>
    %529 = vector.shape_cast %496 : vector<8x1xi1> to vector<8x1xi1>
    %530 = vector.broadcast %529 : vector<8x1xi1> to vector<8x32xi1>
    %531 = arith.select %530, %519, %436 : vector<8x32xi1>, vector<8x32xf32>
    %532 = arith.index_cast %c5_i32 : i32 to index
    %c0_117 = arith.constant 0 : index
    %c0_118 = arith.constant 0 : index
    %533 = vector.load %arg6[%532, %c0_117, %c0_118] : memref<8x8x64xf32, #tpu.memory_space<vmem>>, vector<1x8x32xf32>
    %534 = vector.shape_cast %533 : vector<1x8x32xf32> to vector<8x32xf32>
    %535 = vector.shape_cast %525 : vector<8x32xf32> to vector<1x8x32xf32>
    tpu.vector_store %arg6[%532, %c0_117, %c0_118], %535 {strides = array<i32>} : memref<8x8x64xf32, #tpu.memory_space<vmem>>, vector<1x8x32xf32>,
    %536 = arith.index_cast %488 : i32 to index
    %c0_119 = arith.constant 0 : index
    %c0_120 = arith.constant 0 : index
    %537 = vector.load %arg7[%536, %c0_119, %c0_120] : memref<8x8x256xf32, #tpu.memory_space<vmem>>, vector<1x8x256xf32>
    %538 = vector.shape_cast %537 : vector<1x8x256xf32> to vector<8x256xf32>
    %539 = vector.extract_strided_slice %538 {offsets = [0, 128], sizes = [8, 128], strides = [1, 1]} : vector<8x256xf32> to vector<8x128xf32>
    %cst_121 = arith.constant dense<0.000000e+00> : vector<8x128xf32>
    %540 = tpu.matmul %480, %11, %cst_121 {dimension_numbers = #tpu.dot_dimension_numbers<[1], [0], [0], [1], [0, 0, 1, 1], [], []>} : vector<8x32xf32>, vector<32x128xf32>, vector<8x128xf32> -> vector<8x128xf32>
    %541 = arith.addf %539, %540 : vector<8x128xf32>
    %542 = vector.broadcast %488 : i32 to vector<8x1xi32>
    %543 = arith.cmpi sgt, %9, %542 : vector<8x1xi32>
    %544 = vector.extract_strided_slice %541 {offsets = [0, 0], sizes = [8, 32], strides = [1, 1]} : vector<8x128xf32> to vector<8x32xf32>
    %545 = arith.negf %544 : vector<8x32xf32>
    %546 = math.exp %545 : vector<8x32xf32>
    %cst_122 = arith.constant 1.000000e+00 : f32
    %547 = vector.broadcast %cst_122 : f32 to vector<8x32xf32>
    %548 = arith.addf %547, %546 : vector<8x32xf32>
    %549 = arith.divf %547, %548 : vector<8x32xf32>
    %550 = vector.extract_strided_slice %541 {offsets = [0, 32], sizes = [8, 32], strides = [1, 1]} : vector<8x128xf32> to vector<8x32xf32>
    %551 = arith.negf %550 : vector<8x32xf32>
    %552 = math.exp %551 : vector<8x32xf32>
    %cst_123 = arith.constant 1.000000e+00 : f32
    %553 = vector.broadcast %cst_123 : f32 to vector<8x32xf32>
    %554 = arith.addf %553, %552 : vector<8x32xf32>
    %555 = arith.divf %553, %554 : vector<8x32xf32>
    %556 = vector.extract_strided_slice %541 {offsets = [0, 64], sizes = [8, 32], strides = [1, 1]} : vector<8x128xf32> to vector<8x32xf32>
    %557 = math.tanh %556 : vector<8x32xf32>
    %558 = vector.extract_strided_slice %541 {offsets = [0, 96], sizes = [8, 32], strides = [1, 1]} : vector<8x128xf32> to vector<8x32xf32>
    %559 = arith.negf %558 : vector<8x32xf32>
    %560 = math.exp %559 : vector<8x32xf32>
    %cst_124 = arith.constant 1.000000e+00 : f32
    %561 = vector.broadcast %cst_124 : f32 to vector<8x32xf32>
    %562 = arith.addf %561, %560 : vector<8x32xf32>
    %563 = arith.divf %561, %562 : vector<8x32xf32>
    %564 = arith.mulf %555, %483 : vector<8x32xf32>
    %565 = arith.mulf %549, %557 : vector<8x32xf32>
    %566 = arith.addf %564, %565 : vector<8x32xf32>
    %567 = math.tanh %566 : vector<8x32xf32>
    %568 = arith.mulf %563, %567 : vector<8x32xf32>
    %cst_125 = arith.constant 0.000000e+00 : f32
    %569 = vector.shape_cast %543 : vector<8x1xi1> to vector<8x1xi1>
    %570 = vector.broadcast %569 : vector<8x1xi1> to vector<8x32xi1>
    %571 = vector.broadcast %cst_125 : f32 to vector<8x32xf32>
    %572 = arith.select %570, %568, %571 : vector<8x32xi1>, vector<8x32xf32>
    %573 = vector.shape_cast %543 : vector<8x1xi1> to vector<8x1xi1>
    %574 = vector.broadcast %573 : vector<8x1xi1> to vector<8x32xi1>
    %575 = arith.select %574, %568, %480 : vector<8x32xi1>, vector<8x32xf32>
    %576 = vector.shape_cast %543 : vector<8x1xi1> to vector<8x1xi1>
    %577 = vector.broadcast %576 : vector<8x1xi1> to vector<8x32xi1>
    %578 = arith.select %577, %566, %483 : vector<8x32xi1>, vector<8x32xf32>
    %579 = arith.index_cast %488 : i32 to index
    %c0_126 = arith.constant 0 : index
    %c32_127 = arith.constant 32 : index
    %580 = vector.load %arg6[%579, %c0_126, %c32_127] : memref<8x8x64xf32, #tpu.memory_space<vmem>>, vector<1x8x32xf32>
    %581 = vector.shape_cast %580 : vector<1x8x32xf32> to vector<8x32xf32>
    %582 = vector.shape_cast %572 : vector<8x32xf32> to vector<1x8x32xf32>
    tpu.vector_store %arg6[%579, %c0_126, %c32_127], %582 {strides = array<i32>} : memref<8x8x64xf32, #tpu.memory_space<vmem>>, vector<1x8x32xf32>,
    %c6_i32 = arith.constant 6 : i32
    %c7_i32_128 = arith.constant 7 : i32
    %583 = arith.subi %c7_i32_128, %c6_i32 : i32
    %584 = arith.index_cast %c6_i32 : i32 to index
    %c0_129 = arith.constant 0 : index
    %c0_130 = arith.constant 0 : index
    %585 = vector.load %arg7[%584, %c0_129, %c0_130] : memref<8x8x256xf32, #tpu.memory_space<vmem>>, vector<1x8x256xf32>
    %586 = vector.shape_cast %585 : vector<1x8x256xf32> to vector<8x256xf32>
    %587 = vector.extract_strided_slice %586 {offsets = [0, 0], sizes = [8, 128], strides = [1, 1]} : vector<8x256xf32> to vector<8x128xf32>
    %cst_131 = arith.constant dense<0.000000e+00> : vector<8x128xf32>
    %588 = tpu.matmul %528, %10, %cst_131 {dimension_numbers = #tpu.dot_dimension_numbers<[1], [0], [0], [1], [0, 0, 1, 1], [], []>} : vector<8x32xf32>, vector<32x128xf32>, vector<8x128xf32> -> vector<8x128xf32>
    %589 = arith.addf %587, %588 : vector<8x128xf32>
    %590 = vector.broadcast %c6_i32 : i32 to vector<8x1xi32>
    %591 = arith.cmpi sgt, %9, %590 : vector<8x1xi32>
    %592 = vector.extract_strided_slice %589 {offsets = [0, 0], sizes = [8, 32], strides = [1, 1]} : vector<8x128xf32> to vector<8x32xf32>
    %593 = arith.negf %592 : vector<8x32xf32>
    %594 = math.exp %593 : vector<8x32xf32>
    %cst_132 = arith.constant 1.000000e+00 : f32
    %595 = vector.broadcast %cst_132 : f32 to vector<8x32xf32>
    %596 = arith.addf %595, %594 : vector<8x32xf32>
    %597 = arith.divf %595, %596 : vector<8x32xf32>
    %598 = vector.extract_strided_slice %589 {offsets = [0, 32], sizes = [8, 32], strides = [1, 1]} : vector<8x128xf32> to vector<8x32xf32>
    %599 = arith.negf %598 : vector<8x32xf32>
    %600 = math.exp %599 : vector<8x32xf32>
    %cst_133 = arith.constant 1.000000e+00 : f32
    %601 = vector.broadcast %cst_133 : f32 to vector<8x32xf32>
    %602 = arith.addf %601, %600 : vector<8x32xf32>
    %603 = arith.divf %601, %602 : vector<8x32xf32>
    %604 = vector.extract_strided_slice %589 {offsets = [0, 64], sizes = [8, 32], strides = [1, 1]} : vector<8x128xf32> to vector<8x32xf32>
    %605 = math.tanh %604 : vector<8x32xf32>
    %606 = vector.extract_strided_slice %589 {offsets = [0, 96], sizes = [8, 32], strides = [1, 1]} : vector<8x128xf32> to vector<8x32xf32>
    %607 = arith.negf %606 : vector<8x32xf32>
    %608 = math.exp %607 : vector<8x32xf32>
    %cst_134 = arith.constant 1.000000e+00 : f32
    %609 = vector.broadcast %cst_134 : f32 to vector<8x32xf32>
    %610 = arith.addf %609, %608 : vector<8x32xf32>
    %611 = arith.divf %609, %610 : vector<8x32xf32>
    %612 = arith.mulf %603, %531 : vector<8x32xf32>
    %613 = arith.mulf %597, %605 : vector<8x32xf32>
    %614 = arith.addf %612, %613 : vector<8x32xf32>
    %615 = math.tanh %614 : vector<8x32xf32>
    %616 = arith.mulf %611, %615 : vector<8x32xf32>
    %cst_135 = arith.constant 0.000000e+00 : f32
    %617 = vector.shape_cast %591 : vector<8x1xi1> to vector<8x1xi1>
    %618 = vector.broadcast %617 : vector<8x1xi1> to vector<8x32xi1>
    %619 = vector.broadcast %cst_135 : f32 to vector<8x32xf32>
    %620 = arith.select %618, %616, %619 : vector<8x32xi1>, vector<8x32xf32>
    %621 = vector.shape_cast %591 : vector<8x1xi1> to vector<8x1xi1>
    %622 = vector.broadcast %621 : vector<8x1xi1> to vector<8x32xi1>
    %623 = arith.select %622, %616, %528 : vector<8x32xi1>, vector<8x32xf32>
    %624 = vector.shape_cast %591 : vector<8x1xi1> to vector<8x1xi1>
    %625 = vector.broadcast %624 : vector<8x1xi1> to vector<8x32xi1>
    %626 = arith.select %625, %614, %531 : vector<8x32xi1>, vector<8x32xf32>
    %627 = arith.index_cast %c6_i32 : i32 to index
    %c0_136 = arith.constant 0 : index
    %c0_137 = arith.constant 0 : index
    %628 = vector.load %arg6[%627, %c0_136, %c0_137] : memref<8x8x64xf32, #tpu.memory_space<vmem>>, vector<1x8x32xf32>
    %629 = vector.shape_cast %628 : vector<1x8x32xf32> to vector<8x32xf32>
    %630 = vector.shape_cast %620 : vector<8x32xf32> to vector<1x8x32xf32>
    tpu.vector_store %arg6[%627, %c0_136, %c0_137], %630 {strides = array<i32>} : memref<8x8x64xf32, #tpu.memory_space<vmem>>, vector<1x8x32xf32>,
    %631 = arith.index_cast %583 : i32 to index
    %c0_138 = arith.constant 0 : index
    %c0_139 = arith.constant 0 : index
    %632 = vector.load %arg7[%631, %c0_138, %c0_139] : memref<8x8x256xf32, #tpu.memory_space<vmem>>, vector<1x8x256xf32>
    %633 = vector.shape_cast %632 : vector<1x8x256xf32> to vector<8x256xf32>
    %634 = vector.extract_strided_slice %633 {offsets = [0, 128], sizes = [8, 128], strides = [1, 1]} : vector<8x256xf32> to vector<8x128xf32>
    %cst_140 = arith.constant dense<0.000000e+00> : vector<8x128xf32>
    %635 = tpu.matmul %575, %11, %cst_140 {dimension_numbers = #tpu.dot_dimension_numbers<[1], [0], [0], [1], [0, 0, 1, 1], [], []>} : vector<8x32xf32>, vector<32x128xf32>, vector<8x128xf32> -> vector<8x128xf32>
    %636 = arith.addf %634, %635 : vector<8x128xf32>
    %637 = vector.broadcast %583 : i32 to vector<8x1xi32>
    %638 = arith.cmpi sgt, %9, %637 : vector<8x1xi32>
    %639 = vector.extract_strided_slice %636 {offsets = [0, 0], sizes = [8, 32], strides = [1, 1]} : vector<8x128xf32> to vector<8x32xf32>
    %640 = arith.negf %639 : vector<8x32xf32>
    %641 = math.exp %640 : vector<8x32xf32>
    %cst_141 = arith.constant 1.000000e+00 : f32
    %642 = vector.broadcast %cst_141 : f32 to vector<8x32xf32>
    %643 = arith.addf %642, %641 : vector<8x32xf32>
    %644 = arith.divf %642, %643 : vector<8x32xf32>
    %645 = vector.extract_strided_slice %636 {offsets = [0, 32], sizes = [8, 32], strides = [1, 1]} : vector<8x128xf32> to vector<8x32xf32>
    %646 = arith.negf %645 : vector<8x32xf32>
    %647 = math.exp %646 : vector<8x32xf32>
    %cst_142 = arith.constant 1.000000e+00 : f32
    %648 = vector.broadcast %cst_142 : f32 to vector<8x32xf32>
    %649 = arith.addf %648, %647 : vector<8x32xf32>
    %650 = arith.divf %648, %649 : vector<8x32xf32>
    %651 = vector.extract_strided_slice %636 {offsets = [0, 64], sizes = [8, 32], strides = [1, 1]} : vector<8x128xf32> to vector<8x32xf32>
    %652 = math.tanh %651 : vector<8x32xf32>
    %653 = vector.extract_strided_slice %636 {offsets = [0, 96], sizes = [8, 32], strides = [1, 1]} : vector<8x128xf32> to vector<8x32xf32>
    %654 = arith.negf %653 : vector<8x32xf32>
    %655 = math.exp %654 : vector<8x32xf32>
    %cst_143 = arith.constant 1.000000e+00 : f32
    %656 = vector.broadcast %cst_143 : f32 to vector<8x32xf32>
    %657 = arith.addf %656, %655 : vector<8x32xf32>
    %658 = arith.divf %656, %657 : vector<8x32xf32>
    %659 = arith.mulf %650, %578 : vector<8x32xf32>
    %660 = arith.mulf %644, %652 : vector<8x32xf32>
    %661 = arith.addf %659, %660 : vector<8x32xf32>
    %662 = math.tanh %661 : vector<8x32xf32>
    %663 = arith.mulf %658, %662 : vector<8x32xf32>
    %cst_144 = arith.constant 0.000000e+00 : f32
    %664 = vector.shape_cast %638 : vector<8x1xi1> to vector<8x1xi1>
    %665 = vector.broadcast %664 : vector<8x1xi1> to vector<8x32xi1>
    %666 = vector.broadcast %cst_144 : f32 to vector<8x32xf32>
    %667 = arith.select %665, %663, %666 : vector<8x32xi1>, vector<8x32xf32>
    %668 = vector.shape_cast %638 : vector<8x1xi1> to vector<8x1xi1>
    %669 = vector.broadcast %668 : vector<8x1xi1> to vector<8x32xi1>
    %670 = arith.select %669, %663, %575 : vector<8x32xi1>, vector<8x32xf32>
    %671 = vector.shape_cast %638 : vector<8x1xi1> to vector<8x1xi1>
    %672 = vector.broadcast %671 : vector<8x1xi1> to vector<8x32xi1>
    %673 = arith.select %672, %661, %578 : vector<8x32xi1>, vector<8x32xf32>
    %674 = arith.index_cast %583 : i32 to index
    %c0_145 = arith.constant 0 : index
    %c32_146 = arith.constant 32 : index
    %675 = vector.load %arg6[%674, %c0_145, %c32_146] : memref<8x8x64xf32, #tpu.memory_space<vmem>>, vector<1x8x32xf32>
    %676 = vector.shape_cast %675 : vector<1x8x32xf32> to vector<8x32xf32>
    %677 = vector.shape_cast %667 : vector<8x32xf32> to vector<1x8x32xf32>
    tpu.vector_store %arg6[%674, %c0_145, %c32_146], %677 {strides = array<i32>} : memref<8x8x64xf32, #tpu.memory_space<vmem>>, vector<1x8x32xf32>,
    %c7_i32_147 = arith.constant 7 : i32
    %c7_i32_148 = arith.constant 7 : i32
    %678 = arith.subi %c7_i32_148, %c7_i32_147 : i32
    %679 = arith.index_cast %c7_i32_147 : i32 to index
    %c0_149 = arith.constant 0 : index
    %c0_150 = arith.constant 0 : index
    %680 = vector.load %arg7[%679, %c0_149, %c0_150] : memref<8x8x256xf32, #tpu.memory_space<vmem>>, vector<1x8x256xf32>
    %681 = vector.shape_cast %680 : vector<1x8x256xf32> to vector<8x256xf32>
    %682 = vector.extract_strided_slice %681 {offsets = [0, 0], sizes = [8, 128], strides = [1, 1]} : vector<8x256xf32> to vector<8x128xf32>
    %cst_151 = arith.constant dense<0.000000e+00> : vector<8x128xf32>
    %683 = tpu.matmul %623, %10, %cst_151 {dimension_numbers = #tpu.dot_dimension_numbers<[1], [0], [0], [1], [0, 0, 1, 1], [], []>} : vector<8x32xf32>, vector<32x128xf32>, vector<8x128xf32> -> vector<8x128xf32>
    %684 = arith.addf %682, %683 : vector<8x128xf32>
    %685 = vector.broadcast %c7_i32_147 : i32 to vector<8x1xi32>
    %686 = arith.cmpi sgt, %9, %685 : vector<8x1xi32>
    %687 = vector.extract_strided_slice %684 {offsets = [0, 0], sizes = [8, 32], strides = [1, 1]} : vector<8x128xf32> to vector<8x32xf32>
    %688 = arith.negf %687 : vector<8x32xf32>
    %689 = math.exp %688 : vector<8x32xf32>
    %cst_152 = arith.constant 1.000000e+00 : f32
    %690 = vector.broadcast %cst_152 : f32 to vector<8x32xf32>
    %691 = arith.addf %690, %689 : vector<8x32xf32>
    %692 = arith.divf %690, %691 : vector<8x32xf32>
    %693 = vector.extract_strided_slice %684 {offsets = [0, 32], sizes = [8, 32], strides = [1, 1]} : vector<8x128xf32> to vector<8x32xf32>
    %694 = arith.negf %693 : vector<8x32xf32>
    %695 = math.exp %694 : vector<8x32xf32>
    %cst_153 = arith.constant 1.000000e+00 : f32
    %696 = vector.broadcast %cst_153 : f32 to vector<8x32xf32>
    %697 = arith.addf %696, %695 : vector<8x32xf32>
    %698 = arith.divf %696, %697 : vector<8x32xf32>
    %699 = vector.extract_strided_slice %684 {offsets = [0, 64], sizes = [8, 32], strides = [1, 1]} : vector<8x128xf32> to vector<8x32xf32>
    %700 = math.tanh %699 : vector<8x32xf32>
    %701 = vector.extract_strided_slice %684 {offsets = [0, 96], sizes = [8, 32], strides = [1, 1]} : vector<8x128xf32> to vector<8x32xf32>
    %702 = arith.negf %701 : vector<8x32xf32>
    %703 = math.exp %702 : vector<8x32xf32>
    %cst_154 = arith.constant 1.000000e+00 : f32
    %704 = vector.broadcast %cst_154 : f32 to vector<8x32xf32>
    %705 = arith.addf %704, %703 : vector<8x32xf32>
    %706 = arith.divf %704, %705 : vector<8x32xf32>
    %707 = arith.mulf %698, %626 : vector<8x32xf32>
    %708 = arith.mulf %692, %700 : vector<8x32xf32>
    %709 = arith.addf %707, %708 : vector<8x32xf32>
    %710 = math.tanh %709 : vector<8x32xf32>
    %711 = arith.mulf %706, %710 : vector<8x32xf32>
    %cst_155 = arith.constant 0.000000e+00 : f32
    %712 = vector.shape_cast %686 : vector<8x1xi1> to vector<8x1xi1>
    %713 = vector.broadcast %712 : vector<8x1xi1> to vector<8x32xi1>
    %714 = vector.broadcast %cst_155 : f32 to vector<8x32xf32>
    %715 = arith.select %713, %711, %714 : vector<8x32xi1>, vector<8x32xf32>
    %716 = vector.shape_cast %686 : vector<8x1xi1> to vector<8x1xi1>
    %717 = vector.broadcast %716 : vector<8x1xi1> to vector<8x32xi1>
    %718 = arith.select %717, %711, %623 : vector<8x32xi1>, vector<8x32xf32>
    %719 = vector.shape_cast %686 : vector<8x1xi1> to vector<8x1xi1>
    %720 = vector.broadcast %719 : vector<8x1xi1> to vector<8x32xi1>
    %721 = arith.select %720, %709, %626 : vector<8x32xi1>, vector<8x32xf32>
    %722 = arith.index_cast %c7_i32_147 : i32 to index
    %c0_156 = arith.constant 0 : index
    %c0_157 = arith.constant 0 : index
    %723 = vector.load %arg6[%722, %c0_156, %c0_157] : memref<8x8x64xf32, #tpu.memory_space<vmem>>, vector<1x8x32xf32>
    %724 = vector.shape_cast %723 : vector<1x8x32xf32> to vector<8x32xf32>
    %725 = vector.shape_cast %715 : vector<8x32xf32> to vector<1x8x32xf32>
    tpu.vector_store %arg6[%722, %c0_156, %c0_157], %725 {strides = array<i32>} : memref<8x8x64xf32, #tpu.memory_space<vmem>>, vector<1x8x32xf32>,
    %726 = arith.index_cast %678 : i32 to index
    %c0_158 = arith.constant 0 : index
    %c0_159 = arith.constant 0 : index
    %727 = vector.load %arg7[%726, %c0_158, %c0_159] : memref<8x8x256xf32, #tpu.memory_space<vmem>>, vector<1x8x256xf32>
    %728 = vector.shape_cast %727 : vector<1x8x256xf32> to vector<8x256xf32>
    %729 = vector.extract_strided_slice %728 {offsets = [0, 128], sizes = [8, 128], strides = [1, 1]} : vector<8x256xf32> to vector<8x128xf32>
    %cst_160 = arith.constant dense<0.000000e+00> : vector<8x128xf32>
    %730 = tpu.matmul %670, %11, %cst_160 {dimension_numbers = #tpu.dot_dimension_numbers<[1], [0], [0], [1], [0, 0, 1, 1], [], []>} : vector<8x32xf32>, vector<32x128xf32>, vector<8x128xf32> -> vector<8x128xf32>
    %731 = arith.addf %729, %730 : vector<8x128xf32>
    %732 = vector.broadcast %678 : i32 to vector<8x1xi32>
    %733 = arith.cmpi sgt, %9, %732 : vector<8x1xi32>
    %734 = vector.extract_strided_slice %731 {offsets = [0, 0], sizes = [8, 32], strides = [1, 1]} : vector<8x128xf32> to vector<8x32xf32>
    %735 = arith.negf %734 : vector<8x32xf32>
    %736 = math.exp %735 : vector<8x32xf32>
    %cst_161 = arith.constant 1.000000e+00 : f32
    %737 = vector.broadcast %cst_161 : f32 to vector<8x32xf32>
    %738 = arith.addf %737, %736 : vector<8x32xf32>
    %739 = arith.divf %737, %738 : vector<8x32xf32>
    %740 = vector.extract_strided_slice %731 {offsets = [0, 32], sizes = [8, 32], strides = [1, 1]} : vector<8x128xf32> to vector<8x32xf32>
    %741 = arith.negf %740 : vector<8x32xf32>
    %742 = math.exp %741 : vector<8x32xf32>
    %cst_162 = arith.constant 1.000000e+00 : f32
    %743 = vector.broadcast %cst_162 : f32 to vector<8x32xf32>
    %744 = arith.addf %743, %742 : vector<8x32xf32>
    %745 = arith.divf %743, %744 : vector<8x32xf32>
    %746 = vector.extract_strided_slice %731 {offsets = [0, 64], sizes = [8, 32], strides = [1, 1]} : vector<8x128xf32> to vector<8x32xf32>
    %747 = math.tanh %746 : vector<8x32xf32>
    %748 = vector.extract_strided_slice %731 {offsets = [0, 96], sizes = [8, 32], strides = [1, 1]} : vector<8x128xf32> to vector<8x32xf32>
    %749 = arith.negf %748 : vector<8x32xf32>
    %750 = math.exp %749 : vector<8x32xf32>
    %cst_163 = arith.constant 1.000000e+00 : f32
    %751 = vector.broadcast %cst_163 : f32 to vector<8x32xf32>
    %752 = arith.addf %751, %750 : vector<8x32xf32>
    %753 = arith.divf %751, %752 : vector<8x32xf32>
    %754 = arith.mulf %745, %673 : vector<8x32xf32>
    %755 = arith.mulf %739, %747 : vector<8x32xf32>
    %756 = arith.addf %754, %755 : vector<8x32xf32>
    %757 = math.tanh %756 : vector<8x32xf32>
    %758 = arith.mulf %753, %757 : vector<8x32xf32>
    %cst_164 = arith.constant 0.000000e+00 : f32
    %759 = vector.shape_cast %733 : vector<8x1xi1> to vector<8x1xi1>
    %760 = vector.broadcast %759 : vector<8x1xi1> to vector<8x32xi1>
    %761 = vector.broadcast %cst_164 : f32 to vector<8x32xf32>
    %762 = arith.select %760, %758, %761 : vector<8x32xi1>, vector<8x32xf32>
    %763 = vector.shape_cast %733 : vector<8x1xi1> to vector<8x1xi1>
    %764 = vector.broadcast %763 : vector<8x1xi1> to vector<8x32xi1>
    %765 = arith.select %764, %758, %670 : vector<8x32xi1>, vector<8x32xf32>
    %766 = vector.shape_cast %733 : vector<8x1xi1> to vector<8x1xi1>
    %767 = vector.broadcast %766 : vector<8x1xi1> to vector<8x32xi1>
    %768 = arith.select %767, %756, %673 : vector<8x32xi1>, vector<8x32xf32>
    %769 = arith.index_cast %678 : i32 to index
    %c0_165 = arith.constant 0 : index
    %c32_166 = arith.constant 32 : index
    %770 = vector.load %arg6[%769, %c0_165, %c32_166] : memref<8x8x64xf32, #tpu.memory_space<vmem>>, vector<1x8x32xf32>
    %771 = vector.shape_cast %770 : vector<1x8x32xf32> to vector<8x32xf32>
    %772 = vector.shape_cast %762 : vector<8x32xf32> to vector<1x8x32xf32>
    tpu.vector_store %arg6[%769, %c0_165, %c32_166], %772 {strides = array<i32>} : memref<8x8x64xf32, #tpu.memory_space<vmem>>, vector<1x8x32xf32>,
    %c8_i32 = arith.constant 8 : i32
    return
  }
}

</mosaic_0001>

<bundles_post_ra>
// kernel: tpu_custom_call.1
= control target key start
LH: loop header
LB: loop body
LE: loop exit
PB: predicated region body
PF: predicated region fallthrough
CT: control target
= control target key end

     0   :  { %11 = vsyncpa [#allocation4], 0  ;;  %s2433_s0 = inlined_call_operand.vmem [shape: s32[8,1], index: 0, kind: input, shape index: {}]   ;;  %s2434_s1 = inlined_call_operand.hbm [shape: f32[8,8,32], index: 1, kind: input, shape index: {}]   ;;  %s2435_s2 = inlined_call_operand.hbm [shape: f32[32,256], index: 2, kind: input, shape index: {}]   ;;  %s2436_s3 = inlined_call_operand.vmem [shape: f32[1,256], index: 3, kind: input, shape index: {}]   ;;  %s2437_s4 = inlined_call_operand.hbm [shape: f32[32,128], index: 4, kind: input, shape index: {}]   ;;  %s2438_s5 = inlined_call_operand.hbm [shape: f32[32,128], index: 5, kind: input, shape index: {}]   ;;  %s2439_s6 = inlined_call_operand.hbm [shape: f32[8,8,64], index: 6, kind: output, shape index: {}]  }
   0x1   :  { %12 = vsyncpa [#allocation7], 0 }
   0x2   :  { %13 = vsyncpa [#allocation10], 0  ;;  %s34_s23 = sshll.u32 %s2435_s2, 4  ;;  %s35_s23 = int_to_ptr.hbm [resolvable:$true] %s34_s23 }
   0x3   :  { %14 = vsyncpa [#allocation5], 0  ;;  %s1786_s24 = smov [#allocation6]   ;;  %s21_s28 = sshll.u32 %s2434_s1, 4  ;;  %s22_s28 = int_to_ptr.hbm [resolvable:$true] %s21_s28 }
   0x4   :  { %s36_s25 = sshll.u32 %s1786_s24, 4  ;;  %s1787_s29 = smov 256   ;;  %s37_s25 = int_to_ptr.vmem [resolvable:$true] %s36_s25 }
   0x5   :  { %s1788_s30 = smov 16   ;;  %s1789_s7 = smov [#allocation3]  }
   0x6   :  { %42 = dma.hbm_to_vmem [thread:$0]  %s35_s23, 1024, %s37_s25, [#allocation7], %s1787_s29, %s1787_s29, %s1788_s30  }
   0x7   :  { %s23_s8 = sshll.u32 %s1789_s7, 4  ;;  %s1790_s9 = smov 128   ;;  %s24_s8 = int_to_ptr.vmem [resolvable:$true] %s23_s8 }
   0x8   :  { %s1791_s10 = smov 8   ;;  %s49_s12 = sshll.u32 %s2437_s4, 4  ;;  %s50_s12 = int_to_ptr.hbm [resolvable:$true] %s49_s12 }
   0x9   :  { %29 = dma.hbm_to_vmem [thread:$0]  %s22_s28, 1024, %s24_s8, [#allocation4], %s1790_s9, %s1790_s9, %s1791_s10  }
   0xa   :  { %s1792_s13 = smov [#allocation8]   ;;  %s62_s16 = sshll.u32 %s2438_s5, 4  ;;  %s63_s16 = int_to_ptr.hbm [resolvable:$true] %s62_s16 }
   0xb   :  { %s51_s1 = sshll.u32 %s1792_s13, 4  ;;  %s1793_s17 = smov [#allocation9]   ;;  %s52_s1 = int_to_ptr.vmem [resolvable:$true] %s51_s1 }
   0xc   :  { %57 = dma.hbm_to_vmem [thread:$0]  %s50_s12, 512, %s52_s1, [#allocation7], %s1790_s9, %s1790_s9, %s1791_s10  }
   0xd   :  { %s64_s18 = sshll.u32 %s1793_s17, 4  ;;  %s65_s18 = int_to_ptr.vmem [resolvable:$true] %s64_s18 }
   0xe   :  { %70 = dma.hbm_to_vmem [thread:$0]  %s63_s16, 512, %s65_s18, [#allocation10], %s1790_s9, %s1790_s9, %s1791_s10  }
   0xf   :  { %1778 = dma.done.wait [#allocation4], 1024  }
  0x10   :  { %1779 = vsyncadd [#allocation4], 4294966272 }
  0x11   :  { %1780 = dma.done.wait [#allocation7], 1536  }
  0x12   :  { %1781 = vsyncadd [#allocation7], 4294965760 }
  0x13   :  { %1782 = dma.done.wait [#allocation10], 512  }
  0x14   :  { %1783 = vsyncadd [#allocation10], 4294966784  ;;  %v102_v0 = vld [vmem:[#allocation6 + $0x38] sm:$0xff]  ;;  %v100_v2 = vld [vmem:[#allocation6 + $0x28] sm:$0xff]  ;;  %vm109_vm0 = vcmask 261120   ;;  %v1794_v13 = vmov 0.0  }
  0x15   :  { %v1855_v1 = vld [vmem:[#allocation8 + $0x18] sm:$0xff]  ;;  %187 = vmatpush.msra.mxu1 %v102_v0  ;;  %v1858_v3 = vld [vmem:[#allocation8 + $0x10] sm:$0xff]  ;;  %v1860_v6 = vld [vmem:[#allocation8 + $0x8] sm:$0xff]  ;;  %s1795_s19 = smov 64   ;;  %v1796_v56 = vmov 0   ;;  %s1798_s21 = smov [#allocation11]  }
  0x16   :  { %257 = vmatpush.msra.mxu2 %v1855_v1  ;;  %v101_v4 = vld [vmem:[#allocation6 + $0x30] sm:$0xff]  ;;  %v98_v5 = vld [vmem:[#allocation6 + $0x18] sm:$0xff]  ;;  %v99_v7 = vld [vmem:[#allocation6 + $0x20] sm:$0xff]  ;;  %1519 = vset.pattern.permute.xlu0 %v1796_v56  ;;  %s1443_s22 = sshll.u32 %s1798_s21, 4  ;;  %s1445_s25 = sshll.u32 %s2439_s6, 4  ;;  %s1444_s22 = int_to_ptr.vmem [resolvable:$true] %s1443_s22  ;;  %s1446_s25 = int_to_ptr.hbm [resolvable:$true] %s1445_s25 }
  0x17   :  { %146 = vmatpush.msra.mxu0 %v101_v4  ;;  %188 = vmatpush.msra.mxu1 %v100_v2  ;;  %v97_v8 = vld [vmem:[#allocation6 + $0x10] sm:$0xff]  ;;  %v96_v9 = vld [vmem:[#allocation6 + $0x8] sm:$0xff]  ;;  %v1863_v10 = vld [vmem:[#allocation8] sm:$0xff] }
  0x18   :  { %258 = vmatpush.msra.mxu2 %v1858_v3  ;;  %v87_v11 = vld [vmem:[#allocation3] sm:$0xff]  ;;  %v88_v14 = vld [vmem:[#allocation3 + $0x8] sm:$0xff]  ;;  %v1874_v15 = vld [vmem:[#allocation9 + $0x18] sm:$0xff]  ;;  %1520 = vset.pattern.permute.xlu1 %v1796_v56 }
  0x19   :  { %147 = vmatpush.msra.mxu0 %v99_v7  ;;  %189 = vmatpush.msra.mxu1 %v98_v5  ;;  %v95_v12 = vld [vmem:[#allocation6] sm:$0xff]  ;;  %v1876_v16 = vld [vmem:[#allocation9 + $0x10] sm:$0xff]  ;;  %v1886_v18 = vld [vmem:[#allocation9 + $0x8] sm:$0xff] }
  0x1a   :  { %259 = vmatpush.msra.mxu2 %v1860_v6  ;;  %330 = vmatpush.msra.mxu3 %v1874_v15  ;;  %v89_v17 = vld [vmem:[#allocation3 + $0x10] sm:$0xff]  ;;  %v1888_v19 = vld [vmem:[#allocation9] sm:$0xff]  ;;  %v90_v20 = vld [vmem:[#allocation3 + $0x18] sm:$0xff] }
  0x1b   :  { %148 = vmatpush.msra.mxu0 %v97_v8  ;;  %190 = vmatpush.msra.mxu1 %v96_v9  ;;  %v91_v21 = vld [vmem:[#allocation3 + $0x20] sm:$0xff]  ;;  %v92_v22 = vld [vmem:[#allocation3 + $0x28] sm:$0xff]  ;;  %v93_v23 = vld [vmem:[#allocation3 + $0x30] sm:$0xff] }
  0x1c   :  { %260 = vmatpush.msra.mxu2 %v1863_v10  ;;  %1468 = vmatmul.msk.f32.vlgmr.msra.gmra.mxu1 %vm109_vm0, %v87_v11  ;;  %v94_v24 = vld [vmem:[#allocation3 + $0x38] sm:$0xff]  ;;  %v103_v25 = vld [vmem:[%s2436_s3] sm:$0x3] }
  0x1d   :  { %261 = vmatmul.f32.vlgmr.msra.gmra.mxu2 %v1794_v13  ;;  %149 = vmatpush.msra.mxu0 %v95_v12  ;;  %v106_v26 = vperm.slane %v103_v25, 1  ;;  %v1914_v27 = vperm.slane %v103_v25, 0  ;;  %v1936_v55 = vld [vmem:[%s2433_s0] sm:$0xff]  ;;  %s1797_s0 = smov 32  }
  0x1e   :  { %407 = vmatpush.msrb.mxu2 %v1855_v1  ;;  %1460 = vmatmul.msk.f32.vlgmr.msra.gmra.mxu0 %vm109_vm0, %v87_v11  ;;  %vm266_vm1 = vcmp.gt.s32.totalorder %v1936_v55, 0  ;;  %vm339_vm10 = vcmp.gt.s32.totalorder %v1936_v55, 7 }
  0x1f   :  { %331 = vmatpush.msra.mxu3 %v1876_v16  ;;  %v304_v57 = vsel %vm266_vm1, 1, %v1796_v56  ;;  %1521 = vset.pattern.permute.xlu2 %v1796_v56 }
  0x20   :  { %408 = vmatpush.msrb.mxu2 %v1858_v3 }
  0x21   :  { %332 = vmatpush.msra.mxu3 %v1886_v18 }
  0x22   :  { %409 = vmatpush.msrb.mxu2 %v1860_v6 }
  0x23   :  { %333 = vmatpush.msra.mxu3 %v1888_v19 }
  0x24   :  { %410 = vmatpush.msrb.mxu2 %v1863_v10  ;;  %1469 = vmatmul.msk.f32.gmra.mxu1 %vm109_vm0, %v88_v14 }
  0x25   :  { %334 = vmatmul.f32.vlgmr.msra.gmra.mxu3 %v1794_v13 }
  0x26   :  { %566 = vmatpush.msra.mxu2 %v1855_v1  ;;  %1461 = vmatmul.msk.f32.gmra.mxu0 %vm109_vm0, %v88_v14 }
  0x27   :  { %486 = vmatpush.msrb.mxu3 %v1874_v15 }
  0x28   :  { %567 = vmatpush.msra.mxu2 %v1858_v3 }
  0x29   :  { %487 = vmatpush.msrb.mxu3 %v1876_v16 }
  0x2a   :  { %568 = vmatpush.msra.mxu2 %v1860_v6 }
  0x2b   :  { %488 = vmatpush.msrb.mxu3 %v1886_v18 }
  0x2c   :  { %569 = vmatpush.msra.mxu2 %v1863_v10  ;;  %1470 = vmatmul.msk.f32.gmra.mxu1 %vm109_vm0, %v89_v17 }
  0x2d   :  { %489 = vmatpush.msrb.mxu3 %v1888_v19 }
  0x2e   :  { %1462 = vmatmul.msk.f32.gmra.mxu0 %vm109_vm0, %v89_v17 }
  0x2f   :  { %646 = vmatpush.msra.mxu3 %v1874_v15 }
  0x31   :  { %647 = vmatpush.msra.mxu3 %v1876_v16 }
  0x33   :  { %648 = vmatpush.msra.mxu3 %v1886_v18 }
  0x34   :  { %1471 = vmatmul.msk.f32.gmra.mxu1 %vm109_vm0, %v90_v20 }
  0x35   :  { %649 = vmatpush.msra.mxu3 %v1888_v19 }
  0x36   :  { %1463 = vmatmul.msk.f32.gmra.mxu0 %vm109_vm0, %v90_v20 }
  0x3c   :  { %1472 = vmatmul.msk.f32.gmra.mxu1 %vm109_vm0, %v91_v21 }
  0x3e   :  { %1464 = vmatmul.msk.f32.gmra.mxu0 %vm109_vm0, %v91_v21 }
  0x44   :  { %1473 = vmatmul.msk.f32.gmra.mxu1 %vm109_vm0, %v92_v22 }
  0x46   :  { %1465 = vmatmul.msk.f32.gmra.mxu0 %vm109_vm0, %v92_v22 }
  0x4c   :  { %1474 = vmatmul.msk.f32.gmra.mxu1 %vm109_vm0, %v93_v23 }
  0x4e   :  { %1466 = vmatmul.msk.f32.gmra.mxu0 %vm109_vm0, %v93_v23 }
  0x54   :  { %1475 = vmatmul.msk.f32.gmra.mxu1 %vm109_vm0, %v94_v24 }
  0x56   :  { %1467 = vmatmul.msk.f32.gmra.mxu0 %vm109_vm0, %v94_v24 }
  0x99   :  { %v192_v28 = vpop.f32.mrf.mxu1 }
  0x9a   :  { %v1916_v29 = vadd.f32 %v192_v28, %v106_v26 }
  0x9b   :  { %v151_v30 = vpop.f32.mrf.mxu0 }
  0x9c   :  { %v152_v31 = vadd.f32 %v151_v30, %v1914_v27 }
  0xa0   :  { %v262_v32 = vpop.f32.mrf.mxu2 }
  0xa1   :  { %v265_v33 = vadd.f32 %v262_v32, %v152_v31  ;;  %v195_v34 = vpop.f32.mrf.mxu1  ;;  %v377_v31 = vsel %vm339_vm10, 1, %v1796_v56 }
  0xa2   :  { %v1919_v35 = vadd.f32 %v195_v34, %v106_v26 }
  0xa3   :  { %1522 = vtanh.f32 %v265_v33  ;;  %v1476_v52 = vmul.f32 -1.442695, %v265_v33 }
  0xa8   :  { %v335_v48 = vpop.f32.mrf.mxu3 }
  0xa9   :  { %v1523_v36 = vpop.eup %1522  ;;  %v198_v37 = vpop.f32.mrf.mxu1 }
  0xaa   :  { %289 = vrot.lane.b32.xlu0 %v1523_v36, %s1795_s19  ;;  %v1922_v38 = vadd.f32 %v198_v37, %v106_v26 }
  0xb1   :  { %v201_v39 = vpop.f32.mrf.mxu1 }
  0xb2   :  { %v1924_v40 = vadd.f32 %v201_v39, %v106_v26 }
  0xb9   :  { %v204_v41 = vpop.f32.mrf.mxu1 }
  0xba   :  { %v1926_v42 = vadd.f32 %v204_v41, %v106_v26 }
  0xc1   :  { %v207_v43 = vpop.f32.mrf.mxu1 }
  0xc2   :  { %v1928_v44 = vadd.f32 %v207_v43, %v106_v26 }
  0xc9   :  { %v210_v45 = vpop.f32.mrf.mxu1 }
  0xca   :  { %v1930_v46 = vadd.f32 %v210_v45, %v106_v26 }
  0xd1   :  { %v213_v47 = vpop.f32.mrf.mxu1 }
  0xd2   :  { %v214_v49 = vadd.f32 %v213_v47, %v106_v26 }
  0xd4   :  { %v338_v50 = vadd.f32 %v335_v48, %v214_v49 }
  0xd6   :  { %1524 = vtanh.f32 %v338_v50  ;;  %v1477_v9 = vmul.f32 -1.442695, %v338_v50 }
  0xd7   :  { %1526 = vpow2.f32 %v1476_v52 }
  0xdc   :  { %v1525_v51 = vpop.eup %1524 }
  0xdd   :  { %362 = vrot.lane.b32.xlu0 %v1525_v51, %s1795_s19  ;;  %v1527_v53 = vpop.eup %1526 }
  0xde   :  { %v270_v54 = vadd.f32 1.0, %v1527_v53 }
  0xe0   :  { %1528 = vrcp.f32 %v270_v54  ;;  %vm276_vm2 = vweird.f32 %v270_v54  ;;  %v282_v62 = vand.u32 2147483648, %v270_v54  ;;  %v280_v0 = vand.u32 2147483647, %v270_v54 }
  0xe1   :  { %1530 = vpow2.f32 %v1477_v9 }
  0xe2   :  { %v283_v2 = vor.u32 1.1754944e-38, %v282_v62  ;;  %vm281_vm5 = vcmp.eq.f32.partialorder %v280_v0, 8.507059e+37 }
  0xe5   :  { %306 = vperm.xlu0 %1519, %v304_v57  }
  0xe6   :  { %v1529_v58 = vpop.eup %1528 }
  0xe7   :  { %v272_v59 = vmul.f32 %v1529_v58, %v270_v54  ;;  %vm277_vm3 = vweird.f32 %v1529_v58  ;;  %v1531_v11 = vpop.eup %1530 }
  0xe8   :  { %vm278_vm4 = vmor %vm276_vm2, %vm277_vm3  ;;  %v343_v12 = vadd.f32 1.0, %v1531_v11 }
  0xe9   :  { %v273_v60 = vsub.f32 1.0, %v272_v59 }
  0xea   :  { %1532 = vrcp.f32 %v343_v12  ;;  %v355_v22 = vand.u32 2147483648, %v343_v12  ;;  %vm349_vm7 = vweird.f32 %v343_v12  ;;  %v353_v23 = vand.u32 2147483647, %v343_v12 }
  0xeb   :  { %v274_v61 = vmul.f32 %v1529_v58, %v273_v60 }
  0xec   :  { %v356_v25 = vor.u32 1.1754944e-38, %v355_v22  ;;  %vm354_vm9 = vcmp.eq.f32.partialorder %v353_v23, 8.507059e+37 }
  0xed   :  { %v275_v63 = vadd.f32 %v1529_v58, %v274_v61 }
  0xef   :  { %v279_v4 = vsel %vm278_vm4, %v1529_v58, %v275_v63  ;;  %v154_v58 = vpop.f32.mrf.mxu0 }
  0xf0   :  { %v284_v7 = vsel %vm281_vm5, %v283_v2, %v279_v4  ;;  %v1533_v13 = vpop.eup %1532  ;;  %v155_v59 = vadd.f32 %v154_v58, %v1914_v27 }
  0xf1   :  { %v345_v14 = vmul.f32 %v1533_v13, %v343_v12  ;;  %vm350_vm6 = vweird.f32 %v1533_v13  ;;  %v287_v32 = vmul.f32 0.0, %v284_v7 }
  0xf2   :  { %vm351_vm8 = vmor %vm349_vm7, %vm350_vm6  ;;  %vm416_vm6 = vcmp.gt.s32.totalorder %v1936_v55, 1  ;;  %vm495_vm7 = vcmp.gt.s32.totalorder %v1936_v55, 6 }
  0xf3   :  { %v346_v17 = vsub.f32 1.0, %v345_v14 }
  0xf5   :  { %v347_v20 = vmul.f32 %v1533_v13, %v346_v17 }
  0xf7   :  { %v348_v21 = vadd.f32 %v1533_v13, %v347_v20 }
  0xf9   :  { %v352_v24 = vsel %vm351_vm8, %v1533_v13, %v348_v21 }
  0xfa   :  { %v357_v26 = vsel %vm354_vm9, %v356_v25, %v352_v24 }
  0xfb   :  { %v360_v37 = vmul.f32 0.0, %v357_v26 }
 0x11c   :  { %v290_v5 = vpop.permute.xlu0 %289 }
 0x11d   :  { %v292_v8 = vmul.f32 %v290_v5, %v284_v7 }
 0x11f   :  { %294 = vrot.lane.b32.xlu1 %v292_v8, %s1797_s0 }
 0x14f   :  { %v363_v28 = vpop.permute.xlu0 %362 }
 0x150   :  { %v365_v30 = vmul.f32 %v363_v28, %v357_v26 }
 0x152   :  { %367 = vrot.lane.b32.xlu1 %v365_v30, %s1797_s0 }
 0x157   :  { %v1955_v45 = vpop.permute.xlu0 %306 }
 0x158   :  { %vm308_vm11 = vcmp.eq.s32.totalorder %v1955_v45, 1 }
 0x15a   :  { %379 = vperm.xlu1 %1520, %v377_v31  }
 0x191   :  { %v295_v33 = vpop.permute.xlu1 %294 }
 0x192   :  { %v1947_v34 = vadd.f32 %v295_v33, %v287_v32 }
 0x194   :  { %1534 = vtanh.f32 %v1947_v34 }
 0x19a   :  { %v1535_v36 = vpop.eup %1534 }
 0x19b   :  { %300 = vrot.lane.b32.xlu2 %v1535_v36, %s1795_s19 }
 0x1c4   :  { %v368_v39 = vpop.permute.xlu1 %367 }
 0x1c5   :  { %v1951_v41 = vadd.f32 %v368_v39, %v360_v37 }
 0x1c7   :  { %1536 = vtanh.f32 %v1951_v41 }
 0x1cc   :  { %v1964_v50 = vpop.permute.xlu1 %379 }
 0x1cd   :  { %v1537_v43 = vpop.eup %1536  ;;  %vm381_vm12 = vcmp.eq.s32.totalorder %v1964_v50, 1 }
 0x1ce   :  { %373 = vrot.lane.b32.xlu2 %v1537_v43, %s1795_s19 }
 0x1f5   :  { %v301_v47 = vpop.permute.xlu2 %300 }
 0x1f6   :  { %v303_v48 = vmul.f32 %v301_v47, %v284_v7 }
 0x1f8   :  { %v1960_v49 = vsel %vm308_vm11, %v303_v48, 0.0 }
 0x1f9   :  { %312 = vrot.lane.b32.xlu2 %v1960_v49, %s1797_s0 }
 0x228   :  { %v374_v51 = vpop.permute.xlu2 %373 }
 0x229   :  { %v376_v52 = vmul.f32 %v374_v51, %v357_v26 }
 0x22b   :  { %v1969_v53 = vsel %vm381_vm12, %v376_v52, 0.0  ;;  %v454_v52 = vsel %vm416_vm6, 1, %v1796_v56  ;;  %vm655_vm6 = vcmp.gt.s32.totalorder %v1936_v55, 5 }
 0x22c   :  { %470 = vrot.lane.b32.xlu1 %v1969_v53, %s1797_s0 }
 0x253   :  { %v313_v54 = vpop.permute.xlu2 %312 }
 0x254   :  { %315 = vst.msk [vmem:[#allocation11] sm:$0xff] %vm109_vm0, %v313_v54  ;;  %1478 = vmatmul.msk.f32.vlgmr.msrb.gmra.mxu2 %vm109_vm0, %v313_v54  ;;  %v1995_v54 = vsel %vm308_vm11, %v1947_v34, 0.0  ;;  %v2007_v34 = vsel %vm381_vm12, %v1951_v41, 0.0 }
 0x255   :  { %726 = vmatpush.msrb.mxu2 %v1855_v1 }
 0x257   :  { %727 = vmatpush.msrb.mxu2 %v1858_v3 }
 0x259   :  { %728 = vmatpush.msrb.mxu2 %v1860_v6 }
 0x25b   :  { %729 = vmatpush.msrb.mxu2 %v1863_v10 }
 0x29e   :  { %v471_v57 = vpop.permute.xlu1 %470 }
 0x29f   :  { %1480 = vmatmul.msk.f32.vlgmr.msrb.gmra.mxu3 %vm109_vm0, %v471_v57 }
 0x2a0   :  { %806 = vmatpush.msrb.mxu3 %v1874_v15 }
 0x2a2   :  { %807 = vmatpush.msrb.mxu3 %v1876_v16 }
 0x2a4   :  { %808 = vmatpush.msrb.mxu3 %v1886_v18 }
 0x2a6   :  { %809 = vmatpush.msrb.mxu3 %v1888_v19 }
 0x2d7   :  { %v412_v60 = vpop.f32.mrf.mxu2 }
 0x2d8   :  { %v415_v61 = vadd.f32 %v412_v60, %v155_v59 }
 0x2da   :  { %1538 = vtanh.f32 %v415_v61  ;;  %v1479_v63 = vmul.f32 -1.442695, %v415_v61  ;;  %v533_v61 = vsel %vm495_vm7, 1, %v1796_v56 }
 0x2dc   :  { %1540 = vpow2.f32 %v1479_v63 }
 0x2e0   :  { %v1539_v62 = vpop.eup %1538 }
 0x2e1   :  { %439 = vrot.lane.b32.xlu2 %v1539_v62, %s1795_s19 }
 0x2e2   :  { %v1541_v0 = vpop.eup %1540 }
 0x2e3   :  { %v420_v2 = vadd.f32 1.0, %v1541_v0 }
 0x2e5   :  { %1542 = vrcp.f32 %v420_v2  ;;  %v432_v14 = vand.u32 2147483648, %v420_v2  ;;  %vm426_vm14 = vweird.f32 %v420_v2  ;;  %v430_v17 = vand.u32 2147483647, %v420_v2 }
 0x2e7   :  { %v433_v21 = vor.u32 1.1754944e-38, %v432_v14  ;;  %vm431_vm1 = vcmp.eq.f32.partialorder %v430_v17, 8.507059e+37  ;;  %v157_v14 = vpop.f32.mrf.mxu0 }
 0x2e8   :  { %v158_v17 = vadd.f32 %v157_v14, %v1914_v27 }
 0x2eb   :  { %v1543_v7 = vpop.eup %1542 }
 0x2ec   :  { %v422_v8 = vmul.f32 %v1543_v7, %v420_v2  ;;  %vm427_vm13 = vweird.f32 %v1543_v7 }
 0x2ed   :  { %vm428_vm15 = vmor %vm426_vm14, %vm427_vm13 }
 0x2ee   :  { %v423_v11 = vsub.f32 1.0, %v422_v8 }
 0x2f0   :  { %v424_v12 = vmul.f32 %v1543_v7, %v423_v11 }
 0x2f2   :  { %v425_v13 = vadd.f32 %v1543_v7, %v424_v12 }
 0x2f4   :  { %v429_v20 = vsel %vm428_vm15, %v1543_v7, %v425_v13 }
 0x2f5   :  { %v434_v23 = vsel %vm431_vm1, %v433_v21, %v429_v20 }
 0x2f6   :  { %v437_v57 = vmul.f32 %v434_v23, %v1995_v54 }
 0x322   :  { %v491_v4 = vpop.f32.mrf.mxu3 }
 0x323   :  { %v494_v5 = vadd.f32 %v491_v4, %v1930_v46 }
 0x325   :  { %1544 = vtanh.f32 %v494_v5  ;;  %v1481_v24 = vmul.f32 -1.442695, %v494_v5 }
 0x327   :  { %1546 = vpow2.f32 %v1481_v24 }
 0x32b   :  { %v1545_v9 = vpop.eup %1544 }
 0x32c   :  { %518 = vrot.lane.b32.xlu0 %v1545_v9, %s1795_s19 }
 0x32d   :  { %v1547_v25 = vpop.eup %1546 }
 0x32e   :  { %v499_v26 = vadd.f32 1.0, %v1547_v25 }
 0x330   :  { %1548 = vrcp.f32 %v499_v26  ;;  %v511_v36 = vand.u32 2147483648, %v499_v26  ;;  %vm505_vm3 = vweird.f32 %v499_v26  ;;  %v509_v37 = vand.u32 2147483647, %v499_v26 }
 0x332   :  { %v512_v43 = vor.u32 1.1754944e-38, %v511_v36  ;;  %vm510_vm5 = vcmp.eq.f32.partialorder %v509_v37, 8.507059e+37 }
 0x336   :  { %v1549_v28 = vpop.eup %1548 }
 0x337   :  { %v501_v30 = vmul.f32 %v1549_v28, %v499_v26  ;;  %vm506_vm2 = vweird.f32 %v1549_v28 }
 0x338   :  { %vm507_vm4 = vmor %vm505_vm3, %vm506_vm2 }
 0x339   :  { %v502_v31 = vsub.f32 1.0, %v501_v30 }
 0x33b   :  { %v440_v22 = vpop.permute.xlu2 %439  ;;  %v503_v32 = vmul.f32 %v1549_v28, %v502_v31 }
 0x33c   :  { %v442_v46 = vmul.f32 %v440_v22, %v434_v23 }
 0x33d   :  { %v504_v33 = vadd.f32 %v1549_v28, %v503_v32 }
 0x33e   :  { %444 = vrot.lane.b32.xlu1 %v442_v46, %s1797_s0 }
 0x33f   :  { %v508_v39 = vsel %vm507_vm4, %v1549_v28, %v504_v33 }
 0x340   :  { %v513_v48 = vsel %vm510_vm5, %v512_v43, %v508_v39  ;;  %vm575_vm5 = vcmp.gt.s32.totalorder %v1936_v55, 2 }
 0x341   :  { %v516_v62 = vmul.f32 %v513_v48, %v2007_v34 }
 0x39e   :  { %v519_v47 = vpop.permute.xlu0 %518 }
 0x39f   :  { %v521_v51 = vmul.f32 %v519_v47, %v513_v48 }
 0x3a1   :  { %523 = vrot.lane.b32.xlu2 %v521_v51, %s1797_s0 }
 0x3a9   :  { %456 = vperm.xlu2 %1521, %v454_v52  }
 0x3b0   :  { %v445_v58 = vpop.permute.xlu1 %444 }
 0x3b1   :  { %v1998_v59 = vadd.f32 %v445_v58, %v437_v57 }
 0x3b3   :  { %1550 = vtanh.f32 %v1998_v59 }
 0x3b9   :  { %v1551_v60 = vpop.eup %1550 }
 0x3ba   :  { %450 = vrot.lane.b32.xlu0 %v1551_v60, %s1795_s19 }
 0x3c2   :  { %535 = vperm.xlu0 %1519, %v533_v61  }
 0x3fb   :  { %v524_v63 = vpop.permute.xlu2 %523 }
 0x3fc   :  { %v2010_v0 = vadd.f32 %v524_v63, %v516_v62 }
 0x3fe   :  { %1552 = vtanh.f32 %v2010_v0 }
 0x403   :  { %v2014_v4 = vpop.permute.xlu2 %456 }
 0x404   :  { %v1553_v2 = vpop.eup %1552  ;;  %vm458_vm8 = vcmp.eq.s32.totalorder %v2014_v4, 1 }
 0x405   :  { %529 = vrot.lane.b32.xlu1 %v1553_v2, %s1795_s19 }
 0x42c   :  { %v451_v5 = vpop.permute.xlu0 %450 }
 0x42d   :  { %v2016_v7 = vmul.f32 %v451_v5, %v434_v23 }
 0x42f   :  { %v2023_v41 = vsel %vm458_vm8, %v2016_v7, %v1960_v49 }
 0x430   :  { %550 = vrot.lane.b32.xlu1 %v2023_v41, %s1797_s0 }
 0x434   :  { %v2027_v8 = vpop.permute.xlu0 %535 }
 0x435   :  { %vm537_vm9 = vcmp.eq.s32.totalorder %v2027_v8, 1 }
 0x477   :  { %v530_v9 = vpop.permute.xlu1 %529 }
 0x478   :  { %v2029_v11 = vmul.f32 %v530_v9, %v513_v48 }
 0x47a   :  { %v2036_v12 = vsel %vm537_vm9, %v2029_v11, %v1969_v53  ;;  %v538_v4 = vsel %vm537_vm9, %v2029_v11, 0.0 }
 0x47b   :  { %630 = vrot.lane.b32.xlu2 %v2036_v12, %s1797_s0 }
 0x4a2   :  { %v551_v49 = vpop.permute.xlu1 %550 }
 0x4a3   :  { %1482 = vmatmul.msk.f32.vlgmr.msra.gmra.mxu2 %vm109_vm0, %v551_v49 }
 0x4a4   :  { %885 = vmatpush.msra.mxu2 %v1855_v1 }
 0x4a6   :  { %886 = vmatpush.msra.mxu2 %v1858_v3 }
 0x4a8   :  { %887 = vmatpush.msra.mxu2 %v1860_v6 }
 0x4aa   :  { %888 = vmatpush.msra.mxu2 %v1863_v10 }
 0x4d5   :  { %v631_v13 = vpop.permute.xlu2 %630 }
 0x4d6   :  { %1484 = vmatmul.msk.f32.vlgmr.msra.gmra.mxu3 %vm109_vm0, %v631_v13 }
 0x4d7   :  { %957 = vmatpush.msra.mxu3 %v1874_v15 }
 0x4d9   :  { %958 = vmatpush.msra.mxu3 %v1876_v16 }
 0x4db   :  { %959 = vmatpush.msra.mxu3 %v1886_v18 }
 0x4dd   :  { %960 = vmatpush.msra.mxu3 %v1888_v19 }
 0x526   :  { %v571_v20 = vpop.f32.mrf.mxu2 }
 0x527   :  { %v574_v21 = vadd.f32 %v571_v20, %v158_v17 }
 0x529   :  { %1554 = vtanh.f32 %v574_v21  ;;  %v1483_v25 = vmul.f32 -1.442695, %v574_v21  ;;  %v613_v21 = vsel %vm575_vm5, 1, %v1796_v56 }
 0x52f   :  { %v1555_v22 = vpop.eup %1554 }
 0x530   :  { %598 = vrot.lane.b32.xlu0 %v1555_v22, %s1795_s19  ;;  %v2062_v22 = vsel %vm458_vm8, %v1998_v59, %v1995_v54  ;;  %v2075_v54 = vsel %vm537_vm9, %v2010_v0, %v2007_v34 }
 0x559   :  { %v651_v23 = vpop.f32.mrf.mxu3 }
 0x55a   :  { %v654_v46 = vadd.f32 %v651_v23, %v1928_v44 }
 0x55c   :  { %1556 = vtanh.f32 %v654_v46  ;;  %v1485_v52 = vmul.f32 -1.442695, %v654_v46 }
 0x55d   :  { %1558 = vpow2.f32 %v1483_v25 }
 0x562   :  { %v1557_v24 = vpop.eup %1556 }
 0x563   :  { %678 = vrot.lane.b32.xlu1 %v1557_v24, %s1795_s19  ;;  %v1559_v26 = vpop.eup %1558 }
 0x564   :  { %v579_v28 = vadd.f32 1.0, %v1559_v26  ;;  %v693_v26 = vsel %vm655_vm6, 1, %v1796_v56  ;;  %vm735_vm6 = vcmp.gt.s32.totalorder %v1936_v55, 3 }
 0x566   :  { %1560 = vrcp.f32 %v579_v28  ;;  %v591_v37 = vand.u32 2147483648, %v579_v28  ;;  %vm585_vm13 = vweird.f32 %v579_v28  ;;  %v589_v39 = vand.u32 2147483647, %v579_v28 }
 0x567   :  { %1562 = vpow2.f32 %v1485_v52 }
 0x568   :  { %v592_v43 = vor.u32 1.1754944e-38, %v591_v37  ;;  %vm590_vm15 = vcmp.eq.f32.partialorder %v589_v39, 8.507059e+37 }
 0x56c   :  { %v1561_v30 = vpop.eup %1560 }
 0x56d   :  { %v581_v31 = vmul.f32 %v1561_v30, %v579_v28  ;;  %vm586_vm10 = vweird.f32 %v1561_v30  ;;  %v1563_v57 = vpop.eup %1562 }
 0x56e   :  { %vm587_vm14 = vmor %vm585_vm13, %vm586_vm10  ;;  %v659_v58 = vadd.f32 1.0, %v1563_v57 }
 0x56f   :  { %v582_v32 = vsub.f32 1.0, %v581_v31 }
 0x570   :  { %1564 = vrcp.f32 %v659_v58  ;;  %v671_v5 = vand.u32 2147483648, %v659_v58  ;;  %vm665_vm2 = vweird.f32 %v659_v58  ;;  %v669_v9 = vand.u32 2147483647, %v659_v58 }
 0x571   :  { %v583_v33 = vmul.f32 %v1561_v30, %v582_v32 }
 0x572   :  { %v672_v13 = vor.u32 1.1754944e-38, %v671_v5  ;;  %vm670_vm4 = vcmp.eq.f32.partialorder %v669_v9, 8.507059e+37 }
 0x573   :  { %v584_v36 = vadd.f32 %v1561_v30, %v583_v33 }
 0x575   :  { %v588_v44 = vsel %vm587_vm14, %v1561_v30, %v584_v36 }
 0x576   :  { %v593_v47 = vsel %vm590_vm15, %v592_v43, %v588_v44  ;;  %v1565_v60 = vpop.eup %1564 }
 0x577   :  { %v661_v61 = vmul.f32 %v1565_v60, %v659_v58  ;;  %vm666_vm1 = vweird.f32 %v1565_v60  ;;  %v596_v23 = vmul.f32 %v593_v47, %v2062_v22 }
 0x578   :  { %vm667_vm3 = vmor %vm665_vm2, %vm666_vm1 }
 0x579   :  { %v662_v62 = vsub.f32 1.0, %v661_v61 }
 0x57b   :  { %v663_v63 = vmul.f32 %v1565_v60, %v662_v62 }
 0x57d   :  { %v664_v2 = vadd.f32 %v1565_v60, %v663_v63 }
 0x57f   :  { %v668_v49 = vsel %vm667_vm3, %v1565_v60, %v664_v2 }
 0x580   :  { %v673_v17 = vsel %vm670_vm4, %v672_v13, %v668_v49 }
 0x581   :  { %v676_v59 = vmul.f32 %v673_v17, %v2075_v54 }
 0x5a2   :  { %v599_v48 = vpop.permute.xlu0 %598 }
 0x5a3   :  { %v601_v51 = vmul.f32 %v599_v48, %v593_v47 }
 0x5a5   :  { %603 = vrot.lane.b32.xlu2 %v601_v51, %s1797_s0 }
 0x5d5   :  { %v679_v14 = vpop.permute.xlu1 %678 }
 0x5d6   :  { %v681_v20 = vmul.f32 %v679_v14, %v673_v17 }
 0x5d8   :  { %683 = vrot.lane.b32.xlu0 %v681_v20, %s1797_s0 }
 0x5e0   :  { %615 = vperm.xlu0 %1519, %v613_v21  }
 0x5ff   :  { %v604_v46 = vpop.permute.xlu2 %603 }
 0x600   :  { %v2065_v24 = vadd.f32 %v604_v46, %v596_v23 }
 0x602   :  { %1566 = vtanh.f32 %v2065_v24 }
 0x608   :  { %v1567_v25 = vpop.eup %1566 }
 0x609   :  { %609 = vrot.lane.b32.xlu1 %v1567_v25, %s1795_s19 }
 0x611   :  { %695 = vperm.xlu1 %1520, %v693_v26  }
 0x64a   :  { %v684_v28 = vpop.permute.xlu0 %683 }
 0x64b   :  { %v2078_v30 = vadd.f32 %v684_v28, %v676_v59 }
 0x64d   :  { %1568 = vtanh.f32 %v2078_v30 }
 0x652   :  { %v2082_v32 = vpop.permute.xlu0 %615 }
 0x653   :  { %v1569_v31 = vpop.eup %1568  ;;  %vm617_vm7 = vcmp.eq.s32.totalorder %v2082_v32, 1 }
 0x654   :  { %689 = vrot.lane.b32.xlu2 %v1569_v31, %s1795_s19 }
 0x67b   :  { %v610_v33 = vpop.permute.xlu1 %609 }
 0x67c   :  { %v2084_v36 = vmul.f32 %v610_v33, %v593_v47 }
 0x67e   :  { %v2091_v34 = vsel %vm617_vm7, %v2084_v36, %v2023_v41 }
 0x67f   :  { %710 = vrot.lane.b32.xlu2 %v2091_v34, %s1797_s0 }
 0x683   :  { %v2095_v0 = vpop.permute.xlu1 %695 }
 0x684   :  { %vm697_vm10 = vcmp.eq.s32.totalorder %v2095_v0, 1 }
 0x6ae   :  { %v690_v37 = vpop.permute.xlu2 %689 }
 0x6af   :  { %v2097_v39 = vmul.f32 %v690_v37, %v673_v17 }
 0x6b1   :  { %v2104_v44 = vsel %vm697_vm10, %v2097_v39, %v2036_v12  ;;  %v160_v12 = vpop.f32.mrf.mxu0 }
 0x6b2   :  { %790 = vrot.lane.b32.xlu0 %v2104_v44, %s1797_s0  ;;  %v161_v47 = vadd.f32 %v160_v12, %v1914_v27 }
 0x6d9   :  { %v711_v41 = vpop.permute.xlu2 %710 }
 0x6da   :  { %1486 = vmatmul.msk.f32.vlgmr.msrb.gmra.mxu2 %vm109_vm0, %v711_v41 }
 0x6db   :  { %1029 = vmatpush.msrb.mxu2 %v1855_v1 }
 0x6dd   :  { %1030 = vmatpush.msrb.mxu2 %v1858_v3 }
 0x6df   :  { %1031 = vmatpush.msrb.mxu2 %v1860_v6 }
 0x6e1   :  { %1032 = vmatpush.msrb.mxu2 %v1863_v10 }
 0x724   :  { %v791_v43 = vpop.permute.xlu0 %790 }
 0x725   :  { %1488 = vmatmul.msk.f32.vlgmr.msrb.gmra.mxu3 %vm109_vm0, %v791_v43 }
 0x726   :  { %1101 = vmatpush.msrb.mxu3 %v1874_v15 }
 0x728   :  { %1102 = vmatpush.msrb.mxu3 %v1876_v16 }
 0x72a   :  { %1103 = vmatpush.msrb.mxu3 %v1886_v18 }
 0x72c   :  { %1104 = vmatpush.msrb.mxu3 %v1888_v19 }
 0x75d   :  { %v731_v48 = vpop.f32.mrf.mxu2 }
 0x75e   :  { %v734_v51 = vadd.f32 %v731_v48, %v161_v47 }
 0x760   :  { %1570 = vtanh.f32 %v734_v51  ;;  %v1487_v60 = vmul.f32 -1.442695, %v734_v51 }
 0x766   :  { %v1571_v52 = vpop.eup %1570 }
 0x767   :  { %758 = vrot.lane.b32.xlu1 %v1571_v52, %s1795_s19 }
 0x7a8   :  { %v811_v57 = vpop.f32.mrf.mxu3 }
 0x7a9   :  { %v814_v58 = vadd.f32 %v811_v57, %v1926_v42 }
 0x7ab   :  { %1572 = vtanh.f32 %v814_v58  ;;  %v1489_v25 = vmul.f32 -1.442695, %v814_v58  ;;  %v773_v58 = vsel %vm735_vm6, 1, %v1796_v56 }
 0x7ac   :  { %1574 = vpow2.f32 %v1487_v60  ;;  %v2130_v60 = vsel %vm617_vm7, %v2065_v24, %v2062_v22  ;;  %v2143_v22 = vsel %vm697_vm10, %v2078_v30, %v2075_v54 }
 0x7b1   :  { %v1573_v61 = vpop.eup %1572 }
 0x7b2   :  { %838 = vrot.lane.b32.xlu2 %v1573_v61, %s1795_s19  ;;  %v1575_v62 = vpop.eup %1574 }
 0x7b3   :  { %v739_v63 = vadd.f32 1.0, %v1575_v62 }
 0x7b5   :  { %1576 = vrcp.f32 %v739_v63  ;;  %v751_v14 = vand.u32 2147483648, %v739_v63  ;;  %vm745_vm14 = vweird.f32 %v739_v63  ;;  %v749_v17 = vand.u32 2147483647, %v739_v63 }
 0x7b6   :  { %1578 = vpow2.f32 %v1489_v25 }
 0x7b7   :  { %v752_v20 = vor.u32 1.1754944e-38, %v751_v14  ;;  %vm750_vm1 = vcmp.eq.f32.partialorder %v749_v17, 8.507059e+37 }
 0x7bb   :  { %v1577_v2 = vpop.eup %1576 }
 0x7bc   :  { %v741_v5 = vmul.f32 %v1577_v2, %v739_v63  ;;  %vm746_vm13 = vweird.f32 %v1577_v2  ;;  %v1579_v26 = vpop.eup %1578 }
 0x7bd   :  { %vm747_vm15 = vmor %vm745_vm14, %vm746_vm13  ;;  %v819_v59 = vadd.f32 1.0, %v1579_v26  ;;  %vm815_vm13 = vcmp.gt.s32.totalorder %v1936_v55, 4 }
 0x7be   :  { %v742_v9 = vsub.f32 1.0, %v741_v5  ;;  %v853_v5 = vsel %vm815_vm13, 1, %v1796_v56 }
 0x7bf   :  { %1580 = vrcp.f32 %v819_v59  ;;  %v831_v43 = vand.u32 2147483648, %v819_v59  ;;  %vm825_vm3 = vweird.f32 %v819_v59  ;;  %v829_v12 = vand.u32 2147483647, %v819_v59 }
 0x7c0   :  { %v743_v49 = vmul.f32 %v1577_v2, %v742_v9 }
 0x7c1   :  { %v832_v48 = vor.u32 1.1754944e-38, %v831_v43  ;;  %vm830_vm5 = vcmp.eq.f32.partialorder %v829_v12, 8.507059e+37 }
 0x7c2   :  { %v744_v13 = vadd.f32 %v1577_v2, %v743_v49 }
 0x7c4   :  { %v748_v42 = vsel %vm747_vm15, %v1577_v2, %v744_v13 }
 0x7c5   :  { %v753_v23 = vsel %vm750_vm1, %v752_v20, %v748_v42  ;;  %v1581_v28 = vpop.eup %1580 }
 0x7c6   :  { %v821_v31 = vmul.f32 %v1581_v28, %v819_v59  ;;  %vm826_vm2 = vweird.f32 %v1581_v28  ;;  %v756_v61 = vmul.f32 %v753_v23, %v2130_v60 }
 0x7c7   :  { %vm827_vm4 = vmor %vm825_vm3, %vm826_vm2 }
 0x7c8   :  { %v822_v33 = vsub.f32 1.0, %v821_v31 }
 0x7ca   :  { %v823_v37 = vmul.f32 %v1581_v28, %v822_v33 }
 0x7cc   :  { %v824_v41 = vadd.f32 %v1581_v28, %v823_v37 }
 0x7ce   :  { %v828_v47 = vsel %vm827_vm4, %v1581_v28, %v824_v41 }
 0x7cf   :  { %v833_v52 = vsel %vm830_vm5, %v832_v48, %v828_v47 }
 0x7d0   :  { %v836_v24 = vmul.f32 %v833_v52, %v2143_v22 }
 0x7d9   :  { %v759_v21 = vpop.permute.xlu1 %758 }
 0x7da   :  { %v761_v46 = vmul.f32 %v759_v21, %v753_v23 }
 0x7dc   :  { %763 = vrot.lane.b32.xlu0 %v761_v46, %s1797_s0 }
 0x80c   :  { %v839_v51 = vpop.permute.xlu2 %838 }
 0x80d   :  { %v841_v57 = vmul.f32 %v839_v51, %v833_v52 }
 0x80f   :  { %843 = vrot.lane.b32.xlu1 %v841_v57, %s1797_s0 }
 0x817   :  { %775 = vperm.xlu1 %1520, %v773_v58  }
 0x84e   :  { %v764_v62 = vpop.permute.xlu0 %763 }
 0x84f   :  { %v2133_v63 = vadd.f32 %v764_v62, %v756_v61 }
 0x851   :  { %1582 = vtanh.f32 %v2133_v63 }
 0x857   :  { %v1583_v2 = vpop.eup %1582 }
 0x858   :  { %769 = vrot.lane.b32.xlu2 %v1583_v2, %s1795_s19 }
 0x860   :  { %855 = vperm.xlu2 %1521, %v853_v5  }
 0x881   :  { %v844_v9 = vpop.permute.xlu1 %843 }
 0x882   :  { %v2146_v49 = vadd.f32 %v844_v9, %v836_v24 }
 0x884   :  { %1584 = vtanh.f32 %v2146_v49 }
 0x889   :  { %v2150_v55 = vpop.permute.xlu1 %775 }
 0x88a   :  { %v1585_v13 = vpop.eup %1584  ;;  %vm777_vm14 = vcmp.eq.s32.totalorder %v2150_v55, 1 }
 0x88b   :  { %849 = vrot.lane.b32.xlu0 %v1585_v13, %s1795_s19 }
 0x8b2   :  { %v770_v56 = vpop.permute.xlu2 %769 }
 0x8b3   :  { %v2152_v14 = vmul.f32 %v770_v56, %v753_v23 }
 0x8b5   :  { %v2159_v54 = vsel %vm777_vm14, %v2152_v14, %v2091_v34 }
 0x8b6   :  { %869 = vrot.lane.b32.xlu0 %v2159_v54, %s1797_s0 }
 0x8ba   :  { %v2163_v30 = vpop.permute.xlu2 %855 }
 0x8bb   :  { %vm857_vm15 = vcmp.eq.s32.totalorder %v2163_v30, 1 }
 0x8fd   :  { %v850_v17 = vpop.permute.xlu0 %849 }
 0x8fe   :  { %v2165_v42 = vmul.f32 %v850_v17, %v833_v52 }
 0x900   :  { %v2172_v20 = vsel %vm857_vm15, %v2165_v42, %v2104_v44  ;;  %v163_v44 = vpop.f32.mrf.mxu0 }
 0x901   :  { %941 = vrot.lane.b32.xlu1 %v2172_v20, %s1797_s0 }
 0x928   :  { %v870_v34 = vpop.permute.xlu0 %869 }
 0x929   :  { %1490 = vmatmul.msk.f32.vlgmr.msra.gmra.mxu2 %vm109_vm0, %v870_v34 }
 0x92a   :  { %1173 = vmatpush.msra.mxu2 %v1855_v1  ;;  %v164_v1 = vadd.f32 %v163_v44, %v1914_v27 }
 0x92c   :  { %1174 = vmatpush.msra.mxu2 %v1858_v3 }
 0x92e   :  { %1175 = vmatpush.msra.mxu2 %v1860_v6 }
 0x930   :  { %1176 = vmatpush.msra.mxu2 %v1863_v10 }
 0x973   :  { %v942_v21 = vpop.permute.xlu1 %941 }
 0x974   :  { %1492 = vmatmul.msk.f32.vlgmr.msra.gmra.mxu3 %vm109_vm0, %v942_v21  ;;  %v2196_v21 = vsel %vm777_vm14, %v2133_v63, %v2130_v60 }
 0x975   :  { %1245 = vmatpush.msra.mxu3 %v1874_v15 }
 0x977   :  { %1246 = vmatpush.msra.mxu3 %v1876_v16 }
 0x979   :  { %1247 = vmatpush.msra.mxu3 %v1886_v18 }
 0x97b   :  { %1248 = vmatpush.msra.mxu3 %v1888_v19 }
 0x9ac   :  { %v890_v23 = vpop.f32.mrf.mxu2 }
 0x9ad   :  { %v893_v3 = vadd.f32 %v890_v23, %v164_v1 }
 0x9af   :  { %1586 = vtanh.f32 %v893_v3  ;;  %v1491_v10 = vmul.f32 -1.442695, %v893_v3 }
 0x9b1   :  { %1588 = vpow2.f32 %v1491_v10 }
 0x9b5   :  { %v1587_v6 = vpop.eup %1586 }
 0x9b6   :  { %916 = vrot.lane.b32.xlu2 %v1587_v6, %s1795_s19  ;;  %v2207_v6 = vsel %vm857_vm15, %v2146_v49, %v2143_v22 }
 0x9b7   :  { %v1589_v46 = vpop.eup %1588 }
 0x9b8   :  { %v897_v25 = vadd.f32 1.0, %v1589_v46 }
 0x9ba   :  { %1590 = vrcp.f32 %v897_v25  ;;  %v909_v33 = vand.u32 2147483648, %v897_v25  ;;  %vm903_vm2 = vweird.f32 %v897_v25  ;;  %v907_v37 = vand.u32 2147483647, %v897_v25 }
 0x9bc   :  { %v910_v43 = vor.u32 1.1754944e-38, %v909_v33  ;;  %vm908_vm4 = vcmp.eq.f32.partialorder %v907_v37, 8.507059e+37  ;;  %v1654_v33 = vld [vmem:[#allocation9 + $0x18] sm:$0xff]  ;;  %v1656_v37 = vld [vmem:[#allocation9 + $0x8] sm:$0xff] }
 0x9c0   :  { %v1591_v18 = vpop.eup %1590 }
 0x9c1   :  { %v899_v19 = vmul.f32 %v1591_v18, %v897_v25  ;;  %vm904_vm1 = vweird.f32 %v1591_v18 }
 0x9c2   :  { %vm905_vm3 = vmor %vm903_vm2, %vm904_vm1 }
 0x9c3   :  { %v900_v59 = vsub.f32 1.0, %v899_v19 }
 0x9c5   :  { %v901_v28 = vmul.f32 %v1591_v18, %v900_v59  ;;  %v1652_v59 = vld [vmem:[#allocation8 + $0x8] sm:$0xff] }
 0x9c7   :  { %v902_v31 = vadd.f32 %v1591_v18, %v901_v28  ;;  %v1653_v28 = vld [vmem:[#allocation8] sm:$0xff] }
 0x9c9   :  { %v906_v41 = vsel %vm905_vm3, %v1591_v18, %v902_v31 }
 0x9ca   :  { %v911_v47 = vsel %vm908_vm4, %v910_v43, %v906_v41  ;;  %v1657_v41 = vld [vmem:[#allocation9] sm:$0xff]  ;;  %v166_v43 = vpop.f32.mrf.mxu0 }
 0x9cb   :  { %v914_v44 = vmul.f32 %v911_v47, %v2196_v21 }
 0x9f7   :  { %v962_v15 = vpop.f32.mrf.mxu3 }
 0x9f8   :  { %v965_v16 = vadd.f32 %v962_v15, %v1924_v40 }
 0x9fa   :  { %1592 = vtanh.f32 %v965_v16  ;;  %v1493_v48 = vmul.f32 -1.442695, %v965_v16 }
 0x9fc   :  { %1594 = vpow2.f32 %v1493_v48 }
 0xa00   :  { %v1593_v26 = vpop.eup %1592 }
 0xa01   :  { %988 = vrot.lane.b32.xlu0 %v1593_v26, %s1795_s19  ;;  %v1651_v26 = vld [vmem:[#allocation8 + $0x10] sm:$0xff] }
 0xa02   :  { %v1595_v51 = vpop.eup %1594 }
 0xa03   :  { %v969_v52 = vadd.f32 1.0, %v1595_v51 }
 0xa05   :  { %1596 = vrcp.f32 %v969_v52  ;;  %v981_v5 = vand.u32 2147483648, %v969_v52  ;;  %vm975_vm6 = vweird.f32 %v969_v52  ;;  %v979_v24 = vand.u32 2147483647, %v969_v52 }
 0xa07   :  { %v982_v13 = vor.u32 1.1754944e-38, %v981_v5  ;;  %vm980_vm1 = vcmp.eq.f32.partialorder %v979_v24, 8.507059e+37 }
 0xa0b   :  { %v1597_v57 = vpop.eup %1596 }
 0xa0c   :  { %v971_v58 = vmul.f32 %v1597_v57, %v969_v52  ;;  %vm976_vm5 = vweird.f32 %v1597_v57 }
 0xa0d   :  { %vm977_vm13 = vmor %vm975_vm6, %vm976_vm5 }
 0xa0e   :  { %v972_v61 = vsub.f32 1.0, %v971_v58 }
 0xa10   :  { %v917_v12 = vpop.permute.xlu2 %916  ;;  %v973_v62 = vmul.f32 %v1597_v57, %v972_v61 }
 0xa11   :  { %v919_v40 = vmul.f32 %v917_v12, %v911_v47  ;;  %v167_v12 = vadd.f32 %v166_v43, %v1914_v27 }
 0xa12   :  { %v974_v2 = vadd.f32 %v1597_v57, %v973_v62 }
 0xa13   :  { %921 = vrot.lane.b32.xlu1 %v919_v40, %s1797_s0 }
 0xa14   :  { %v978_v9 = vsel %vm977_vm13, %v1597_v57, %v974_v2 }
 0xa15   :  { %v983_v56 = vsel %vm980_vm1, %v982_v13, %v978_v9 }
 0xa16   :  { %v986_v10 = vmul.f32 %v983_v56, %v2207_v6 }
 0xa73   :  { %v989_v17 = vpop.permute.xlu0 %988 }
 0xa74   :  { %v991_v34 = vmul.f32 %v989_v17, %v983_v56 }
 0xa76   :  { %993 = vrot.lane.b32.xlu2 %v991_v34, %s1797_s0 }
 0xa85   :  { %v922_v1 = vpop.permute.xlu1 %921 }
 0xa86   :  { %v2199_v23 = vadd.f32 %v922_v1, %v914_v44 }
 0xa88   :  { %1598 = vtanh.f32 %v2199_v23  ;;  %v2246_v43 = vsel %vm857_vm15, %v2199_v23, %v2196_v21 }
 0xa8e   :  { %v1599_v3 = vpop.eup %1598 }
 0xa8f   :  { %927 = vrot.lane.b32.xlu0 %v1599_v3, %s1795_s19 }
 0xad0   :  { %v994_v60 = vpop.permute.xlu2 %993 }
 0xad1   :  { %v2210_v63 = vadd.f32 %v994_v60, %v986_v10 }
 0xad3   :  { %1600 = vtanh.f32 %v2210_v63 }
 0xad9   :  { %v1601_v46 = vpop.eup %1600 }
 0xada   :  { %999 = vrot.lane.b32.xlu1 %v1601_v46, %s1795_s19 }
 0xb01   :  { %v928_v25 = vpop.permute.xlu0 %927 }
 0xb02   :  { %v2214_v15 = vmul.f32 %v928_v25, %v911_v47 }
 0xb04   :  { %v2220_v16 = vsel %vm857_vm15, %v2214_v15, %v2159_v54  ;;  %v1650_v54 = vld [vmem:[#allocation8 + $0x18] sm:$0xff] }
 0xb05   :  { %1013 = vrot.lane.b32.xlu2 %v2220_v16, %s1797_s0 }
 0xb4c   :  { %v1000_v22 = vpop.permute.xlu1 %999 }
 0xb4d   :  { %v2224_v49 = vmul.f32 %v1000_v22, %v983_v56 }
 0xb4f   :  { %v2230_v18 = vsel %vm777_vm14, %v2224_v49, %v2172_v20  ;;  %v1655_v20 = vld [vmem:[#allocation9 + $0x10] sm:$0xff] }
 0xb50   :  { %1085 = vrot.lane.b32.xlu0 %v2230_v18, %s1797_s0 }
 0xb5f   :  { %v1014_v19 = vpop.permute.xlu2 %1013 }
 0xb60   :  { %1494 = vmatmul.msk.f32.vlgmr.msrb.gmra.mxu2 %vm109_vm0, %v1014_v19 }
 0xb61   :  { %1317 = vmatpush.msrb.mxu2 %v1650_v54 }
 0xb63   :  { %1318 = vmatpush.msrb.mxu2 %v1651_v26 }
 0xb65   :  { %1319 = vmatpush.msrb.mxu2 %v1652_v59 }
 0xb67   :  { %1320 = vmatpush.msrb.mxu2 %v1653_v28 }
 0xbc2   :  { %v1086_v31 = vpop.permute.xlu0 %1085 }
 0xbc3   :  { %1496 = vmatmul.msk.f32.vlgmr.msrb.gmra.mxu3 %vm109_vm0, %v1086_v31 }
 0xbc4   :  { %1387 = vmatpush.msrb.mxu3 %v1654_v33 }
 0xbc6   :  { %1388 = vmatpush.msrb.mxu3 %v1655_v20 }
 0xbc8   :  { %1389 = vmatpush.msrb.mxu3 %v1656_v37 }
 0xbca   :  { %1390 = vmatpush.msrb.mxu3 %v1657_v41 }
 0xbe3   :  { %v1034_v47 = vpop.f32.mrf.mxu2 }
 0xbe4   :  { %v1037_v40 = vadd.f32 %v1034_v47, %v167_v12 }
 0xbe6   :  { %1602 = vtanh.f32 %v1037_v40  ;;  %v1495_v51 = vmul.f32 -1.442695, %v1037_v40 }
 0xbe8   :  { %1604 = vpow2.f32 %v1495_v51  ;;  %v2257_v51 = vsel %vm777_vm14, %v2210_v63, %v2207_v6 }
 0xbec   :  { %v1603_v48 = vpop.eup %1602 }
 0xbed   :  { %1060 = vrot.lane.b32.xlu1 %v1603_v48, %s1795_s19 }
 0xbee   :  { %v1605_v52 = vpop.eup %1604 }
 0xbef   :  { %v1041_v57 = vadd.f32 1.0, %v1605_v52 }
 0xbf1   :  { %1606 = vrcp.f32 %v1041_v57  ;;  %v1053_v56 = vand.u32 2147483648, %v1041_v57  ;;  %vm1047_vm3 = vweird.f32 %v1041_v57  ;;  %v1051_v17 = vand.u32 2147483647, %v1041_v57 }
 0xbf3   :  { %v1054_v44 = vor.u32 1.1754944e-38, %v1053_v56  ;;  %vm1052_vm5 = vcmp.eq.f32.partialorder %v1051_v17, 8.507059e+37 }
 0xbf7   :  { %v1607_v62 = vpop.eup %1606 }
 0xbf8   :  { %v1043_v2 = vmul.f32 %v1607_v62, %v1041_v57  ;;  %vm1048_vm2 = vweird.f32 %v1607_v62 }
 0xbf9   :  { %vm1049_vm4 = vmor %vm1047_vm3, %vm1048_vm2 }
 0xbfa   :  { %v1044_v24 = vsub.f32 1.0, %v1043_v2 }
 0xbfc   :  { %v1045_v9 = vmul.f32 %v1607_v62, %v1044_v24  ;;  %v169_v24 = vpop.f32.mrf.mxu0 }
 0xbfe   :  { %v1046_v13 = vadd.f32 %v1607_v62, %v1045_v9  ;;  %v170_v9 = vadd.f32 %v169_v24, %v1914_v27 }
 0xc00   :  { %v1050_v34 = vsel %vm1049_vm4, %v1607_v62, %v1046_v13 }
 0xc01   :  { %v1055_v3 = vsel %vm1052_vm5, %v1054_v44, %v1050_v34 }
 0xc02   :  { %v1058_v12 = vmul.f32 %v1055_v3, %v2246_v43 }
 0xc46   :  { %v1106_v58 = vpop.f32.mrf.mxu3 }
 0xc47   :  { %v1109_v61 = vadd.f32 %v1106_v58, %v1922_v38 }
 0xc49   :  { %1608 = vtanh.f32 %v1109_v61  ;;  %v1497_v10 = vmul.f32 -1.442695, %v1109_v61 }
 0xc4b   :  { %1610 = vpow2.f32 %v1497_v10 }
 0xc4f   :  { %v1609_v5 = vpop.eup %1608 }
 0xc50   :  { %1132 = vrot.lane.b32.xlu2 %v1609_v5, %s1795_s19 }
 0xc51   :  { %v1611_v60 = vpop.eup %1610 }
 0xc52   :  { %v1113_v46 = vadd.f32 1.0, %v1611_v60 }
 0xc54   :  { %1612 = vrcp.f32 %v1113_v46  ;;  %v1125_v59 = vand.u32 2147483648, %v1113_v46  ;;  %vm1119_vm13 = vweird.f32 %v1113_v46  ;;  %v1123_v28 = vand.u32 2147483647, %v1113_v46 }
 0xc56   :  { %v1126_v33 = vor.u32 1.1754944e-38, %v1125_v59  ;;  %vm1124_vm2 = vcmp.eq.f32.partialorder %v1123_v28, 8.507059e+37 }
 0xc5a   :  { %v1613_v25 = vpop.eup %1612 }
 0xc5b   :  { %v1115_v22 = vmul.f32 %v1613_v25, %v1113_v46  ;;  %vm1120_vm6 = vweird.f32 %v1613_v25 }
 0xc5c   :  { %vm1121_vm1 = vmor %vm1119_vm13, %vm1120_vm6 }
 0xc5d   :  { %v1116_v19 = vsub.f32 1.0, %v1115_v22 }
 0xc5f   :  { %v1061_v1 = vpop.permute.xlu1 %1060  ;;  %v1117_v54 = vmul.f32 %v1613_v25, %v1116_v19 }
 0xc60   :  { %v1063_v38 = vmul.f32 %v1061_v1, %v1055_v3 }
 0xc61   :  { %v1118_v26 = vadd.f32 %v1613_v25, %v1117_v54 }
 0xc62   :  { %1065 = vrot.lane.b32.xlu0 %v1063_v38, %s1797_s0 }
 0xc63   :  { %v1122_v31 = vsel %vm1121_vm1, %v1613_v25, %v1118_v26 }
 0xc64   :  { %v1127_v37 = vsel %vm1124_vm2, %v1126_v33, %v1122_v31 }
 0xc65   :  { %v1130_v52 = vmul.f32 %v1127_v37, %v2257_v51 }
 0xcaa   :  { %v1133_v20 = vpop.permute.xlu2 %1132 }
 0xcab   :  { %v1135_v41 = vmul.f32 %v1133_v20, %v1127_v37 }
 0xcad   :  { %1137 = vrot.lane.b32.xlu1 %v1135_v41, %s1797_s0 }
 0xcd4   :  { %v1066_v47 = vpop.permute.xlu0 %1065 }
 0xcd5   :  { %v2249_v40 = vadd.f32 %v1066_v47, %v1058_v12 }
 0xcd7   :  { %1614 = vtanh.f32 %v2249_v40 }
 0xcdd   :  { %v1615_v48 = vpop.eup %1614 }
 0xcde   :  { %1071 = vrot.lane.b32.xlu2 %v1615_v48, %s1795_s19 }
 0xd1f   :  { %v1138_v21 = vpop.permute.xlu1 %1137 }
 0xd20   :  { %v2260_v23 = vadd.f32 %v1138_v21, %v1130_v52 }
 0xd22   :  { %1616 = vtanh.f32 %v2260_v23 }
 0xd28   :  { %v1617_v57 = vpop.eup %1616 }
 0xd29   :  { %1143 = vrot.lane.b32.xlu0 %v1617_v57, %s1795_s19 }
 0xd38   :  { %v1072_v58 = vpop.permute.xlu2 %1071 }
 0xd39   :  { %v2264_v61 = vmul.f32 %v1072_v58, %v1055_v3 }
 0xd3b   :  { %v2270_v62 = vsel %vm697_vm10, %v2264_v61, %v2220_v16 }
 0xd3c   :  { %1157 = vrot.lane.b32.xlu1 %v2270_v62, %s1797_s0 }
 0xd9b   :  { %v1144_v6 = vpop.permute.xlu0 %1143 }
 0xd9c   :  { %v2274_v63 = vmul.f32 %v1144_v6, %v1127_v37 }
 0xd9e   :  { %v2280_v2 = vsel %vm617_vm7, %v2274_v63, %v2230_v18 }
 0xd9f   :  { %1229 = vrot.lane.b32.xlu2 %v2280_v2, %s1797_s0 }
 0xdae   :  { %v1158_v5 = vpop.permute.xlu1 %1157 }
 0xdaf   :  { %1498 = vmatmul.msk.f32.vlgmr.msra.gmra.mxu2 %vm109_vm0, %v1158_v5 }
 0xdf9   :  { %v1230_v16 = vpop.permute.xlu2 %1229 }
 0xdfa   :  { %1500 = vmatmul.msk.f32.vlgmr.msra.gmra.mxu3 %vm109_vm0, %v1230_v16 }
 0xe32   :  { %v1178_v13 = vpop.f32.mrf.mxu2 }
 0xe33   :  { %v1181_v56 = vadd.f32 %v1178_v13, %v170_v9  ;;  %v2296_v9 = vsel %vm697_vm10, %v2249_v40, %v2246_v43 }
 0xe35   :  { %1618 = vtanh.f32 %v1181_v56  ;;  %v1499_v44 = vmul.f32 -1.442695, %v1181_v56 }
 0xe3b   :  { %v1619_v17 = vpop.eup %1618 }
 0xe3c   :  { %1204 = vrot.lane.b32.xlu0 %v1619_v17, %s1795_s19 }
 0xe7d   :  { %v1250_v18 = vpop.f32.mrf.mxu3 }
 0xe7e   :  { %v1253_v34 = vadd.f32 %v1250_v18, %v1919_v35 }
 0xe80   :  { %1620 = vtanh.f32 %v1253_v34  ;;  %v1501_v33 = vmul.f32 -1.442695, %v1253_v34  ;;  %v2307_v34 = vsel %vm617_vm7, %v2260_v23, %v2257_v51 }
 0xe81   :  { %1622 = vpow2.f32 %v1499_v44 }
 0xe86   :  { %v1621_v1 = vpop.eup %1620 }
 0xe87   :  { %1276 = vrot.lane.b32.xlu1 %v1621_v1, %s1795_s19  ;;  %v1623_v3 = vpop.eup %1622 }
 0xe88   :  { %v1185_v38 = vadd.f32 1.0, %v1623_v3 }
 0xe8a   :  { %1624 = vrcp.f32 %v1185_v38  ;;  %v1197_v19 = vand.u32 2147483648, %v1185_v38  ;;  %vm1191_vm4 = vweird.f32 %v1185_v38  ;;  %v1195_v54 = vand.u32 2147483647, %v1185_v38 }
 0xe8b   :  { %1626 = vpow2.f32 %v1501_v33 }
 0xe8c   :  { %v1198_v26 = vor.u32 1.1754944e-38, %v1197_v19  ;;  %vm1196_vm6 = vcmp.eq.f32.partialorder %v1195_v54, 8.507059e+37 }
 0xe90   :  { %v1625_v10 = vpop.eup %1624 }
 0xe91   :  { %v1187_v60 = vmul.f32 %v1625_v10, %v1185_v38  ;;  %vm1192_vm3 = vweird.f32 %v1625_v10  ;;  %v1627_v20 = vpop.eup %1626 }
 0xe92   :  { %vm1193_vm5 = vmor %vm1191_vm4, %vm1192_vm3  ;;  %v1257_v37 = vadd.f32 1.0, %v1627_v20 }
 0xe93   :  { %v1188_v46 = vsub.f32 1.0, %v1187_v60 }
 0xe94   :  { %1628 = vrcp.f32 %v1257_v37  ;;  %v1269_v21 = vand.u32 2147483648, %v1257_v37  ;;  %vm1263_vm1 = vweird.f32 %v1257_v37  ;;  %v1267_v57 = vand.u32 2147483647, %v1257_v37 }
 0xe95   :  { %v1189_v25 = vmul.f32 %v1625_v10, %v1188_v46 }
 0xe96   :  { %v1270_v6 = vor.u32 1.1754944e-38, %v1269_v21  ;;  %vm1268_vm3 = vcmp.eq.f32.partialorder %v1267_v57, 8.507059e+37 }
 0xe97   :  { %v1190_v22 = vadd.f32 %v1625_v10, %v1189_v25 }
 0xe99   :  { %v1194_v35 = vsel %vm1193_vm5, %v1625_v10, %v1190_v22  ;;  %v172_v22 = vpop.f32.mrf.mxu0 }
 0xe9a   :  { %v1199_v59 = vsel %vm1196_vm6, %v1198_v26, %v1194_v35  ;;  %v1629_v41 = vpop.eup %1628 }
 0xe9b   :  { %v1259_v12 = vmul.f32 %v1629_v41, %v1257_v37  ;;  %vm1264_vm13 = vweird.f32 %v1629_v41  ;;  %v1202_v13 = vmul.f32 %v1199_v59, %v2296_v9 }
 0xe9c   :  { %vm1265_vm2 = vmor %vm1263_vm1, %vm1264_vm13 }
 0xe9d   :  { %v1260_v47 = vsub.f32 1.0, %v1259_v12 }
 0xe9f   :  { %v1261_v48 = vmul.f32 %v1629_v41, %v1260_v47 }
 0xea1   :  { %v1262_v52 = vadd.f32 %v1629_v41, %v1261_v48 }
 0xea3   :  { %v1266_v58 = vsel %vm1265_vm2, %v1629_v41, %v1262_v52 }
 0xea4   :  { %v1271_v16 = vsel %vm1268_vm3, %v1270_v6, %v1266_v58 }
 0xea5   :  { %v1274_v44 = vmul.f32 %v1271_v16, %v2307_v34 }
 0xeae   :  { %v1205_v28 = vpop.permute.xlu0 %1204 }
 0xeaf   :  { %v1207_v31 = vmul.f32 %v1205_v28, %v1199_v59 }
 0xeb1   :  { %1209 = vrot.lane.b32.xlu2 %v1207_v31, %s1797_s0 }
 0xef9   :  { %v1277_v5 = vpop.permute.xlu1 %1276 }
 0xefa   :  { %v1279_v24 = vmul.f32 %v1277_v5, %v1271_v16 }
 0xefc   :  { %1281 = vrot.lane.b32.xlu0 %v1279_v24, %s1797_s0 }
 0xf0b   :  { %v1210_v56 = vpop.permute.xlu2 %1209 }
 0xf0c   :  { %v2299_v17 = vadd.f32 %v1210_v56, %v1202_v13 }
 0xf0e   :  { %1630 = vtanh.f32 %v2299_v17 }
 0xf14   :  { %v1631_v18 = vpop.eup %1630 }
 0xf15   :  { %1215 = vrot.lane.b32.xlu1 %v1631_v18, %s1795_s19 }
 0xf6e   :  { %v1282_v43 = vpop.permute.xlu0 %1281 }
 0xf6f   :  { %v2310_v40 = vadd.f32 %v1282_v43, %v1274_v44 }
 0xf71   :  { %1632 = vtanh.f32 %v2310_v40  ;;  %v1293_v0 = vsel %vm458_vm8, %v2310_v40, %v2307_v34  ;;  %v778_v34 = vsel %vm777_vm14, %v2152_v14, 0.0  ;;  %v1003_v40 = vsel %vm777_vm14, %v2224_v49, 0.0 }
 0xf77   :  { %v1633_v1 = vpop.eup %1632 }
 0xf78   :  { %1287 = vrot.lane.b32.xlu2 %v1633_v1, %s1795_s19 }
 0xf87   :  { %v1216_v3 = vpop.permute.xlu1 %1215 }
 0xf88   :  { %v2314_v38 = vmul.f32 %v1216_v3, %v1199_v59 }
 0xf8a   :  { %v1220_v10 = vsel %vm537_vm9, %v2314_v38, %v2270_v62  ;;  %v173_v62 = vadd.f32 %v172_v22, %v1914_v27  ;;  %v1219_v11 = vsel %vm537_vm9, %v2314_v38, 0.0 }
 0xf8b   :  { %1301 = vrot.lane.b32.xlu0 %v1220_v10, %s1797_s0 }
 0xfd2   :  { %v1288_v51 = vpop.permute.xlu2 %1287 }
 0xfd3   :  { %v2321_v23 = vmul.f32 %v1288_v51, %v1271_v16 }
 0xfd5   :  { %v1292_v60 = vsel %vm458_vm8, %v2321_v23, %v2280_v2 }
 0xfd6   :  { %1371 = vrot.lane.b32.xlu1 %v1292_v60, %s1797_s0 }
 0xffd   :  { %v1302_v46 = vpop.permute.xlu0 %1301 }
 0xffe   :  { %1502 = vmatmul.msk.f32.vlgmr.msrb.gmra.mxu2 %vm109_vm0, %v1302_v46 }
0x1048   :  { %v1372_v25 = vpop.permute.xlu1 %1371 }
0x1049   :  { %1504 = vmatmul.msk.f32.vlgmr.msrb.gmra.mxu3 %vm109_vm0, %v1372_v25  ;;  %v1221_v25 = vsel %vm537_vm9, %v2299_v17, %v2296_v9  ;;  %v459_v9 = vsel %vm458_vm8, %v2016_v7, 0.0  ;;  %v1291_v17 = vsel %vm458_vm8, %v2321_v23, 0.0  ;;  %v931_v7 = vsel %vm857_vm15, %v2214_v15, 0.0 }
0x1081   :  { %v1322_v19 = vpop.f32.mrf.mxu2 }
0x1082   :  { %v1325_v54 = vadd.f32 %v1322_v19, %v173_v62 }
0x1084   :  { %1634 = vtanh.f32 %v1325_v54  ;;  %v1503_v26 = vmul.f32 -1.442695, %v1325_v54  ;;  %v618_v54 = vsel %vm617_vm7, %v2084_v36, 0.0  ;;  %v1075_v36 = vsel %vm697_vm10, %v2264_v61, 0.0 }
0x1085   :  { %v1147_v61 = vsel %vm617_vm7, %v2274_v63, 0.0 }
0x1086   :  { %1636 = vpow2.f32 %v1503_v26 }
0x108a   :  { %v1635_v35 = vpop.eup %1634 }
0x108b   :  { %1348 = vrot.lane.b32.xlu2 %v1635_v35, %s1795_s19 }
0x108c   :  { %v1637_v2 = vpop.eup %1636 }
0x108d   :  { %v1329_v59 = vadd.f32 1.0, %v1637_v2 }
0x108f   :  { %1638 = vrcp.f32 %v1329_v59  ;;  %v1341_v47 = vand.u32 2147483648, %v1329_v59  ;;  %vm1335_vm5 = vweird.f32 %v1329_v59  ;;  %v1339_v48 = vand.u32 2147483647, %v1329_v59 }
0x1091   :  { %v1342_v21 = vor.u32 1.1754944e-38, %v1341_v47  ;;  %vm1340_vm13 = vcmp.eq.f32.partialorder %v1339_v48, 8.507059e+37 }
0x1095   :  { %v1639_v33 = vpop.eup %1638 }
0x1096   :  { %v1331_v20 = vmul.f32 %v1639_v33, %v1329_v59  ;;  %vm1336_vm4 = vweird.f32 %v1639_v33 }
0x1097   :  { %vm1337_vm6 = vmor %vm1335_vm5, %vm1336_vm4 }
0x1098   :  { %v1332_v41 = vsub.f32 1.0, %v1331_v20 }
0x109a   :  { %v1333_v27 = vmul.f32 %v1639_v33, %v1332_v41 }
0x109c   :  { %v1334_v12 = vadd.f32 %v1639_v33, %v1333_v27 }
0x109e   :  { %v1338_v52 = vsel %vm1337_vm6, %v1639_v33, %v1334_v12 }
0x109f   :  { %v2334_v58 = vsel %vm1340_vm13, %v1342_v21, %v1338_v52 }
0x10a0   :  { %v1346_v22 = vmul.f32 %v2334_v58, %v1221_v25 }
0x10cc   :  { %v1392_v28 = vpop.f32.mrf.mxu3 }
0x10cd   :  { %v1395_v31 = vadd.f32 %v1392_v28, %v1916_v29 }
0x10cf   :  { %1640 = vtanh.f32 %v1395_v31  ;;  %v1505_v6 = vmul.f32 -1.442695, %v1395_v31 }
0x10d1   :  { %1642 = vpow2.f32 %v1505_v6 }
0x10d5   :  { %v1641_v37 = vpop.eup %1640 }
0x10d6   :  { %1418 = vrot.lane.b32.xlu0 %v1641_v37, %s1795_s19 }
0x10d7   :  { %v1643_v5 = vpop.eup %1642 }
0x10d8   :  { %v1399_v16 = vadd.f32 1.0, %v1643_v5 }
0x10da   :  { %1644 = vrcp.f32 %v1399_v16  ;;  %v1411_v43 = vand.u32 2147483648, %v1399_v16  ;;  %vm1405_vm2 = vweird.f32 %v1399_v16  ;;  %v1409_v1 = vand.u32 2147483647, %v1399_v16 }
0x10dc   :  { %v1412_v10 = vor.u32 1.1754944e-38, %v1411_v43  ;;  %vm1410_vm4 = vcmp.eq.f32.partialorder %v1409_v1, 8.507059e+37 }
0x10e0   :  { %v1645_v24 = vpop.eup %1644 }
0x10e1   :  { %v1401_v13 = vmul.f32 %v1645_v24, %v1399_v16  ;;  %vm1406_vm1 = vweird.f32 %v1645_v24 }
0x10e2   :  { %vm1407_vm3 = vmor %vm1405_vm2, %vm1406_vm1 }
0x10e3   :  { %v1402_v56 = vsub.f32 1.0, %v1401_v13 }
0x10e5   :  { %v1349_v57 = vpop.permute.xlu2 %1348  ;;  %v1403_v18 = vmul.f32 %v1645_v24, %v1402_v56 }
0x10e6   :  { %v1351_v29 = vmul.f32 %v1349_v57, %v2334_v58 }
0x10e7   :  { %v1404_v44 = vadd.f32 %v1645_v24, %v1403_v18 }
0x10e8   :  { %1353 = vrot.lane.b32.xlu1 %v1351_v29, %s1797_s0 }
0x10e9   :  { %v1408_v3 = vsel %vm1407_vm3, %v1645_v24, %v1404_v44 }
0x10ea   :  { %v2338_v51 = vsel %vm1410_vm4, %v1412_v10, %v1408_v3 }
0x1148   :  { %v1419_v60 = vpop.permute.xlu0 %1418 }
0x1149   :  { %v1421_v46 = vmul.f32 %v1419_v60, %v2338_v51 }
0x114b   :  { %1423 = vrot.lane.b32.xlu2 %v1421_v46, %s1797_s0 }
0x1153   :  { %385 = vrot.lane.b32.xlu2 %v1969_v53, %s1795_s19  ;;  %v858_v53 = vsel %vm857_vm15, %v2165_v42, 0.0  ;;  %v698_v42 = vsel %vm697_vm10, %v2097_v39, 0.0  ;;  %v1416_v39 = vmul.f32 %v2338_v51, %v1293_v0  ;;  %vm389_vm10 = vcmask 523520  }
0x115a   :  { %v1354_v62 = vpop.permute.xlu1 %1353 }
0x115b   :  { %v1356_v19 = vadd.f32 %v1354_v62, %v1346_v22  ;;  %622 = vrot.lane.b32.xlu2 %v618_v54, %s1797_s0 }
0x115d   :  { %1646 = vtanh.f32 %v1356_v19 }
0x1163   :  { %v1647_v35 = vpop.eup %1646  ;;  %862 = vrot.lane.b32.xlu2 %v858_v53, %s1795_s19 }
0x1164   :  { %1359 = vrot.lane.b32.xlu0 %v1647_v35, %s1795_s19 }
0x116b   :  { %1079 = vrot.lane.b32.xlu2 %v1075_v36, %s1797_s0 }
0x116c   :  { %463 = vrot.lane.b32.xlu0 %v459_v9, %s1797_s0 }
0x1173   :  { %1295 = vrot.lane.b32.xlu2 %v1291_v17, %s1795_s19 }
0x1174   :  { %702 = vrot.lane.b32.xlu0 %v698_v42, %s1795_s19 }
0x117c   :  { %935 = vrot.lane.b32.xlu0 %v931_v7, %s1797_s0 }
0x1184   :  { %1151 = vrot.lane.b32.xlu0 %v1147_v61, %s1795_s19 }
0x11a5   :  { %v1424_v23 = vpop.permute.xlu2 %1423 }
0x11a6   :  { %v1426_v26 = vadd.f32 %v1424_v23, %v1416_v39 }
0x11a8   :  { %1648 = vtanh.f32 %v1426_v26 }
0x11ad   :  { %v386_v30 = vpop.permute.xlu2 %385 }
0x11ae   :  { %v1649_v15 = vpop.eup %1648  ;;  %390 = vst.msk [vmem:[#allocation11 + $0x38] sm:$0xff] %vm389_vm10, %v386_v30 }
0x11af   :  { %1429 = vrot.lane.b32.xlu1 %v1649_v15, %s1795_s19 }
0x11b5   :  { %v623_v32 = vpop.permute.xlu2 %622 }
0x11b6   :  { %626 = vst.msk [vmem:[#allocation11 + $0x10] sm:$0xff] %vm109_vm0, %v623_v32 }
0x11b7   :  { %542 = vrot.lane.b32.xlu1 %v538_v4, %s1795_s19 }
0x11bd   :  { %v863_v63 = vpop.permute.xlu2 %862 }
0x11be   :  { %866 = vst.msk [vmem:[#allocation11 + $0x20] sm:$0xff] %vm389_vm10, %v863_v63 }
0x11bf   :  { %782 = vrot.lane.b32.xlu1 %v778_v34, %s1797_s0 }
0x11c5   :  { %v1080_v2 = vpop.permute.xlu2 %1079 }
0x11c7   :  { %1007 = vrot.lane.b32.xlu1 %v1003_v40, %s1795_s19 }
0x11cd   :  { %v1296_v55 = vpop.permute.xlu2 %1295 }
0x11cf   :  { %1223 = vrot.lane.b32.xlu1 %v1219_v11, %s1797_s0 }
0x11d6   :  { %v1360_v59 = vpop.permute.xlu0 %1359 }
0x11d7   :  { %v1362_v28 = vmul.f32 %v1360_v59, %v2334_v58 }
0x11d9   :  { %v1363_v14 = vsel %vm381_vm12, %v1362_v28, 0.0 }
0x11da   :  { %1365 = vrot.lane.b32.xlu0 %v1363_v14, %s1797_s0 }
0x11de   :  { %v464_v31 = vpop.permute.xlu0 %463 }
0x11df   :  { %467 = vst.msk [vmem:[#allocation11 + $0x8] sm:$0xff] %vm109_vm0, %v464_v31 }
0x11e0   :  { %1298 = vst.msk [vmem:[#allocation11 + $0x8] sm:$0xff] %vm389_vm10, %v1296_v55 }
0x11e6   :  { %v703_v49 = vpop.permute.xlu0 %702 }
0x11e7   :  { %706 = vst.msk [vmem:[#allocation11 + $0x28] sm:$0xff] %vm389_vm10, %v703_v49 }
0x11e8   :  { %1082 = vst.msk [vmem:[#allocation11 + $0x28] sm:$0xff] %vm109_vm0, %v1080_v2 }
0x11ee   :  { %v936_v8 = vpop.permute.xlu0 %935 }
0x11ef   :  { %938 = vst.msk [vmem:[#allocation11 + $0x20] sm:$0xff] %vm109_vm0, %v936_v8 }
0x11f6   :  { %v1152_v38 = vpop.permute.xlu0 %1151 }
0x11f7   :  { %1154 = vst.msk [vmem:[#allocation11 + $0x10] sm:$0xff] %vm389_vm10, %v1152_v38 }
0x1221   :  { %v1430_v50 = vpop.permute.xlu1 %1429 }
0x1222   :  { %v1432_v33 = vmul.f32 %v1430_v50, %v2338_v51 }
0x1224   :  { %v1433_v20 = vsel %vm308_vm11, %v1432_v33, 0.0 }
0x1225   :  { %1435 = vrot.lane.b32.xlu1 %v1433_v20, %s1795_s19 }
0x1229   :  { %v543_v37 = vpop.permute.xlu1 %542 }
0x122a   :  { %546 = vst.msk [vmem:[#allocation11 + $0x30] sm:$0xff] %vm389_vm10, %v543_v37 }
0x1231   :  { %v783_v41 = vpop.permute.xlu1 %782 }
0x1232   :  { %786 = vst.msk [vmem:[#allocation11 + $0x18] sm:$0xff] %vm109_vm0, %v783_v41 }
0x1239   :  { %v1008_v27 = vpop.permute.xlu1 %1007 }
0x123a   :  { %1010 = vst.msk [vmem:[#allocation11 + $0x18] sm:$0xff] %vm389_vm10, %v1008_v27 }
0x1241   :  { %v1224_v12 = vpop.permute.xlu1 %1223 }
0x1242   :  { %1226 = vst.msk [vmem:[#allocation11 + $0x30] sm:$0xff] %vm109_vm0, %v1224_v12 }
0x124c   :  { %v1366_v47 = vpop.permute.xlu0 %1365 }
0x124d   :  { %1368 = vst.msk [vmem:[#allocation11 + $0x38] sm:$0xff] %vm109_vm0, %v1366_v47 }
0x1297   :  { %v1436_v45 = vpop.permute.xlu1 %1435 }
0x1298   :  { %1438 = vst.msk [vmem:[#allocation11] sm:$0xff] %vm389_vm10, %v1436_v45 }
0x1299   :  { %1451 = dma.vmem_to_hbm [thread:$0]  %s1444_s22, 1024, %s1446_s25, [#allocation5], %s1790_s9, %s1790_s9, %s1791_s10  }
0x129a   :  { %1784 = dma.done.wait [#allocation5], 1024  }
0x129b   :  { %1785 = vsyncadd [#allocation5], 4294966272 }
0x129c   :  { %1456 = vsyncpa [#allocation4], 1 }
0x129d   :  { %1457 = vsyncpa [#allocation7], 1 }
0x129e   :  { %1458 = vsyncpa [#allocation10], 1 }
0x129f   :  { %1459 = vsyncpa [#allocation5], 1 }

</bundles_post_ra>
